<compile_context>
chip_gen: v7x
topology: tpu7x:2x2x1
jax: 0.10.0
libtpu: 0.0.40
codegen_flags: <defaults>
</compile_context>

<pallas_src>
import functools

import jax
import jax.numpy as jnp
from jax.experimental import pallas as pl
from jax.experimental.pallas import tpu as pltpu


def _round_up(v: int, m: int) -> int:
    return (v + m - 1) // m * m


def _gnn_kernel(graph_ref, x_ref, out_ref, ego_ref, acc_ref, mxu_ref, *, layer_num: int):
    """One E-column slab of the propagation; whole bf16 graph resident in VMEM.

    graph_ref: (Np, Np) bf16  -- dense normalized adjacency, zero-padded
    x_ref:     (Np, TE) x.dtype
    out_ref:   (Np, TE) x.dtype
    ego_ref / acc_ref: (Np, TE) f32 scratch
    mxu_ref:   (Np, TE) bf16 scratch (MXU RHS operand)
    """
    graph = graph_ref[...]                               # bf16 MXU LHS
    ego_ref[...] = x_ref[...].astype(jnp.float32)
    acc_ref[...] = ego_ref[...]
    # layer_num is small & static -> unrolled loop, one MXU matmul per layer.
    for _ in range(layer_num):
        mxu_ref[...] = ego_ref[...].astype(jnp.bfloat16)
        agg = jnp.dot(graph, mxu_ref[...], preferred_element_type=jnp.float32)
        ego = agg + agg * ego_ref[...]                    # f32 elementwise update
        ego_ref[...] = ego
        acc_ref[...] = acc_ref[...] + ego
    out_ref[...] = (acc_ref[...] * (1.0 / float(layer_num + 1))).astype(out_ref.dtype)


def prepare_graph(graph: jax.Array, *, node_pad: int = 128) -> jax.Array:
    """Pad N to a multiple of `node_pad` and cast to bf16 (hoist out of hot path).

    Zero padding is exact for this recurrence: padded rows/cols stay zero."""
    assert node_pad % 128 == 0
    n = graph.shape[0]
    assert graph.shape == (n, n)
    n_pad = _round_up(n, node_pad)
    return jnp.pad(graph.astype(jnp.bfloat16), ((0, n_pad - n), (0, n_pad - n)))


def _choose_te(e_pad: int, n_pad: int, x_bytes: int, slab_budget: int, emb_tile: int) -> int:
    """Embedding-tile width TE: multiple of 128 dividing e_pad, fits slab_budget.

    Preference order: even slab count >= 2 (megacore balance), 256-column
    multiple (v6e/v7x MXU width), largest. Tiny E collapses to one slab."""
    # Per TE-column VMEM bytes: double-buffered in/out slabs (x dtype) +
    # f32 ego/acc scratch + bf16 MXU operand + one f32 matmul-result temp.
    per_col = n_pad * (2 * x_bytes + 2 * x_bytes + 4 + 4 + 2 + 4)
    cands = [t for t in range(128, e_pad + 1, 128) if e_pad % t == 0]
    fits = [t for t in cands if t * per_col <= slab_budget] or cands[:1]
    te_cap = max(128, (emb_tile // 128) * 128)
    capped = [t for t in fits if t <= te_cap] or [min(fits)]
    if e_pad in capped:                      # tiny problem: one fused slab
        return e_pad

    def score(t):
        steps = e_pad // t
        return (steps % 2 == 0 and steps >= 2, t % 256 == 0, t)

    return max(capped, key=score)


def gnn_forward_prepared(graph_p: jax.Array, x: jax.Array, layer_num: int,
                         *, emb_tile: int = 512) -> jax.Array:
    """Hot-path entry: graph_p is the padded bf16 graph from prepare_graph()."""
    n, e = x.shape
    n_pad = graph_p.shape[0]
    assert graph_p.shape == (n_pad, n_pad) and graph_p.dtype == jnp.bfloat16
    assert n_pad >= n and n_pad % 128 == 0

    e_pad = _round_up(e, 128)
    x_p = jnp.pad(x, ((0, n_pad - n), (0, e_pad - e)))    # keep x's dtype
    x_bytes = x_p.dtype.itemsize

    # Generation-aware VMEM budget (v5e/v6e ~128 MiB, v7x 64 MiB per core).
    try:
        vmem_cap = int(pltpu.get_tpu_info().vmem_capacity_bytes)
    except Exception:  # conservative fallback
        vmem_cap = 64 << 20
    vmem_budget = max(vmem_cap - (8 << 20), 16 << 20)

    graph_bytes = n_pad * n_pad * 2                        # single-buffered bf16 graph
    te = _choose_te(e_pad, n_pad, x_bytes, vmem_budget - graph_bytes, emb_tile)
    grid = (e_pad // te,)

    per_col = n_pad * (2 * x_bytes + 2 * x_bytes + 4 + 4 + 2 + 4)
    vmem_est = graph_bytes + te * per_col + (2 << 20)
    vmem_limit = int(min(max(vmem_est, 32 << 20), vmem_budget))

    cost = pl.CostEstimate(
        flops=2 * layer_num * n_pad * n_pad * e_pad + 3 * layer_num * n_pad * e_pad,
        transcendentals=0,
        bytes_accessed=graph_bytes + 2 * n_pad * e_pad * x_bytes,
    )
    kernel = functools.partial(_gnn_kernel, layer_num=layer_num)

    def run(single_buffer_graph: bool):
        if single_buffer_graph:
            # Constant block index -> fetched once; single buffer halves the
            # resident graph footprint vs the default double-buffering.
            graph_spec = pl.BlockSpec((n_pad, n_pad), lambda j: (0, 0),
                                      pipeline_mode=pl.Buffered(1))
        else:
            graph_spec = pl.BlockSpec((n_pad, n_pad), lambda j: (0, 0))
        return pl.pallas_call(
            kernel,
            out_shape=jax.ShapeDtypeStruct((n_pad, e_pad), x_p.dtype),
            grid_spec=pltpu.PrefetchScalarGridSpec(
                num_scalar_prefetch=0,
                grid=grid,
                in_specs=[
                    graph_spec,
                    pl.BlockSpec((n_pad, te), lambda j: (0, j)),
                ],
                out_specs=pl.BlockSpec((n_pad, te), lambda j: (0, j)),
                scratch_shapes=[
                    pltpu.VMEM((n_pad, te), jnp.float32),    # ego
                    pltpu.VMEM((n_pad, te), jnp.float32),    # acc
                    pltpu.VMEM((n_pad, te), jnp.bfloat16),   # bf16 MXU operand
                ],
            ),
            compiler_params=pltpu.CompilerParams(
                dimension_semantics=("parallel",),
                vmem_limit_bytes=vmem_limit,
            ),
            cost_estimate=cost,
        )(graph_p, x_p)

    try:
        out_p = run(single_buffer_graph=True)
    except Exception:
        # Pallas versions without BlockSpec pipeline_mode support: fall back
        # to the default (double-buffered but still resident) graph block.
        out_p = run(single_buffer_graph=False)

    return out_p[:n, :e]


def gnn_forward(graph: jax.Array, x: jax.Array, layer_num: int,
                *, emb_tile: int = 512, node_pad: int = 128) -> jax.Array:
    """Convenience wrapper (pads/casts the graph per call).  For repeated calls
    on the same graph, call prepare_graph() once and use gnn_forward_prepared."""
    return gnn_forward_prepared(prepare_graph(graph, node_pad=node_pad), x,
                                layer_num, emb_tile=emb_tile)


def gnn_reference(graph, x, layer_num, matmul_dtype=jnp.float32):
    """Pure-JAX reference; matmul_dtype=bf16 emulates the kernel's MXU dtype."""
    g = graph.astype(matmul_dtype)
    ego = x.astype(jnp.float32)
    acc = ego
    for _ in range(layer_num):
        agg = jnp.dot(g, ego.astype(matmul_dtype), preferred_element_type=jnp.float32)
        ego = agg + agg * ego
        acc = acc + ego
    return acc / float(layer_num + 1)


if __name__ == "__main__":
    # Small deterministic problem: 64 nodes, 256-dim embeddings, 3 GNN layers.
    N, EMB, LAYER_NUM = 64, 256, 3

    key = jax.random.PRNGKey(0)
    k_graph, k_x = jax.random.split(key)

    # Dense row-normalized "adjacency" standing in for the sparse graph tensor.
    raw = jax.random.uniform(k_graph, (N, N), dtype=jnp.float32)
    graph = raw / jnp.sum(raw, axis=1, keepdims=True)
    x = jax.random.normal(k_x, (N, EMB), dtype=jnp.float32)

    # Hoist the pad+cast of the graph out of the hot path (done once).
    graph_p = prepare_graph(graph)

    # Default config: the TE heuristic collapses this tiny problem to a single slab.
    out = jax.block_until_ready(gnn_forward_prepared(graph_p, x, LAYER_NUM))
    assert out.shape == (N, EMB) and out.dtype == x.dtype

    # Also exercise the multi-slab (grid > 1) path.
    out_multi = jax.block_until_ready(
        gnn_forward_prepared(graph_p, x, LAYER_NUM, emb_tile=128))
    assert out_multi.shape == (N, EMB)

    # Primary check: reference using the same bf16 matmul dtype.
    ref_bf16 = gnn_reference(graph, x, LAYER_NUM, matmul_dtype=jnp.bfloat16)
    # Sanity check: full-f32 reference with bf16-appropriate slack.
    ref_f32 = gnn_reference(graph, x, LAYER_NUM, matmul_dtype=jnp.float32)
    for o in (out, out_multi):
        assert jnp.allclose(o, ref_bf16, atol=1e-2, rtol=1e-2), "mismatch vs bf16 reference"
        assert jnp.allclose(o, ref_f32, atol=5e-2, rtol=5e-2), "mismatch vs f32 reference"

    print("KERNEL_OK")
</pallas_src>

<mosaic_0001>
module attributes {stable_mosaic.version = 11 : i64} {
  func.func @_gnn_kernel(%arg0: i32, %arg1: memref<128x128xbf16, #tpu.memory_space<vmem>>, %arg2: memref<128x256xf32, #tpu.memory_space<vmem>>, %arg3: memref<128x256xf32, #tpu.memory_space<vmem>>, %arg4: memref<128x256xf32, #tpu.memory_space<vmem>>, %arg5: memref<128x256xf32, #tpu.memory_space<vmem>>, %arg6: memref<128x256xbf16, #tpu.memory_space<vmem>>) attributes {dimension_semantics = [#tpu.dimension_semantics<parallel>], iteration_bounds = array<i64: 1>, scalar_prefetch = 0 : i64, scratch_operands = 3 : i64, tpu.core_type = #tpu.core_type<tc>, window_params = [{pipeline_mode = #tpu.pipeline_mode<synchronous>, transform_indices = @transform_0, window_bounds = array<i64: 128, 128>}, {transform_indices = @transform_1, window_bounds = array<i64: 128, 256>}, {transform_indices = @transform_2, window_bounds = array<i64: 128, 256>}]} {
    %c0 = arith.constant 0 : index
    %c0_0 = arith.constant 0 : index
    %0 = vector.load %arg1[%c0, %c0_0] : memref<128x128xbf16, #tpu.memory_space<vmem>>, vector<128x128xbf16>
    %c0_1 = arith.constant 0 : index
    %c0_2 = arith.constant 0 : index
    %1 = vector.load %arg2[%c0_1, %c0_2] : memref<128x256xf32, #tpu.memory_space<vmem>>, vector<128x256xf32>
    %c0_3 = arith.constant 0 : index
    %c0_4 = arith.constant 0 : index
    %2 = vector.load %arg4[%c0_3, %c0_4] : memref<128x256xf32, #tpu.memory_space<vmem>>, vector<128x256xf32>
    tpu.vector_store %arg4[%c0_3, %c0_4], %1 {strides = array<i32>} : memref<128x256xf32, #tpu.memory_space<vmem>>, vector<128x256xf32>,
    %c0_5 = arith.constant 0 : index
    %c0_6 = arith.constant 0 : index
    %3 = vector.load %arg4[%c0_5, %c0_6] : memref<128x256xf32, #tpu.memory_space<vmem>>, vector<128x256xf32>
    %c0_7 = arith.constant 0 : index
    %c0_8 = arith.constant 0 : index
    %4 = vector.load %arg5[%c0_7, %c0_8] : memref<128x256xf32, #tpu.memory_space<vmem>>, vector<128x256xf32>
    tpu.vector_store %arg5[%c0_7, %c0_8], %3 {strides = array<i32>} : memref<128x256xf32, #tpu.memory_space<vmem>>, vector<128x256xf32>,
    %c0_9 = arith.constant 0 : index
    %c0_10 = arith.constant 0 : index
    %5 = vector.load %arg4[%c0_9, %c0_10] : memref<128x256xf32, #tpu.memory_space<vmem>>, vector<128x256xf32>
    %6 = arith.truncf %5 : vector<128x256xf32> to vector<128x256xbf16>
    %c0_11 = arith.constant 0 : index
    %c0_12 = arith.constant 0 : index
    %7 = vector.load %arg6[%c0_11, %c0_12] : memref<128x256xbf16, #tpu.memory_space<vmem>>, vector<128x256xbf16>
    tpu.vector_store %arg6[%c0_11, %c0_12], %6 {strides = array<i32>} : memref<128x256xbf16, #tpu.memory_space<vmem>>, vector<128x256xbf16>,
    %c0_13 = arith.constant 0 : index
    %c0_14 = arith.constant 0 : index
    %8 = vector.load %arg6[%c0_13, %c0_14] : memref<128x256xbf16, #tpu.memory_space<vmem>>, vector<128x256xbf16>
    %cst = arith.constant dense<0.000000e+00> : vector<128x256xf32>
    %9 = tpu.matmul %0, %8, %cst {dimension_numbers = #tpu.dot_dimension_numbers<[1], [0], [0], [1], [0, 0, 1, 1], [], []>} : vector<128x128xbf16>, vector<128x256xbf16>, vector<128x256xf32> -> vector<128x256xf32>
    %c0_15 = arith.constant 0 : index
    %c0_16 = arith.constant 0 : index
    %10 = vector.load %arg4[%c0_15, %c0_16] : memref<128x256xf32, #tpu.memory_space<vmem>>, vector<128x256xf32>
    %11 = arith.mulf %9, %10 : vector<128x256xf32>
    %12 = arith.addf %9, %11 : vector<128x256xf32>
    %c0_17 = arith.constant 0 : index
    %c0_18 = arith.constant 0 : index
    %13 = vector.load %arg4[%c0_17, %c0_18] : memref<128x256xf32, #tpu.memory_space<vmem>>, vector<128x256xf32>
    tpu.vector_store %arg4[%c0_17, %c0_18], %12 {strides = array<i32>} : memref<128x256xf32, #tpu.memory_space<vmem>>, vector<128x256xf32>,
    %c0_19 = arith.constant 0 : index
    %c0_20 = arith.constant 0 : index
    %14 = vector.load %arg5[%c0_19, %c0_20] : memref<128x256xf32, #tpu.memory_space<vmem>>, vector<128x256xf32>
    %15 = arith.addf %14, %12 : vector<128x256xf32>
    %c0_21 = arith.constant 0 : index
    %c0_22 = arith.constant 0 : index
    %16 = vector.load %arg5[%c0_21, %c0_22] : memref<128x256xf32, #tpu.memory_space<vmem>>, vector<128x256xf32>
    tpu.vector_store %arg5[%c0_21, %c0_22], %15 {strides = array<i32>} : memref<128x256xf32, #tpu.memory_space<vmem>>, vector<128x256xf32>,
    %c0_23 = arith.constant 0 : index
    %c0_24 = arith.constant 0 : index
    %17 = vector.load %arg4[%c0_23, %c0_24] : memref<128x256xf32, #tpu.memory_space<vmem>>, vector<128x256xf32>
    %18 = arith.truncf %17 : vector<128x256xf32> to vector<128x256xbf16>
    %c0_25 = arith.constant 0 : index
    %c0_26 = arith.constant 0 : index
    %19 = vector.load %arg6[%c0_25, %c0_26] : memref<128x256xbf16, #tpu.memory_space<vmem>>, vector<128x256xbf16>
    tpu.vector_store %arg6[%c0_25, %c0_26], %18 {strides = array<i32>} : memref<128x256xbf16, #tpu.memory_space<vmem>>, vector<128x256xbf16>,
    %c0_27 = arith.constant 0 : index
    %c0_28 = arith.constant 0 : index
    %20 = vector.load %arg6[%c0_27, %c0_28] : memref<128x256xbf16, #tpu.memory_space<vmem>>, vector<128x256xbf16>
    %cst_29 = arith.constant dense<0.000000e+00> : vector<128x256xf32>
    %21 = tpu.matmul %0, %20, %cst_29 {dimension_numbers = #tpu.dot_dimension_numbers<[1], [0], [0], [1], [0, 0, 1, 1], [], []>} : vector<128x128xbf16>, vector<128x256xbf16>, vector<128x256xf32> -> vector<128x256xf32>
    %c0_30 = arith.constant 0 : index
    %c0_31 = arith.constant 0 : index
    %22 = vector.load %arg4[%c0_30, %c0_31] : memref<128x256xf32, #tpu.memory_space<vmem>>, vector<128x256xf32>
    %23 = arith.mulf %21, %22 : vector<128x256xf32>
    %24 = arith.addf %21, %23 : vector<128x256xf32>
    %c0_32 = arith.constant 0 : index
    %c0_33 = arith.constant 0 : index
    %25 = vector.load %arg4[%c0_32, %c0_33] : memref<128x256xf32, #tpu.memory_space<vmem>>, vector<128x256xf32>
    tpu.vector_store %arg4[%c0_32, %c0_33], %24 {strides = array<i32>} : memref<128x256xf32, #tpu.memory_space<vmem>>, vector<128x256xf32>,
    %c0_34 = arith.constant 0 : index
    %c0_35 = arith.constant 0 : index
    %26 = vector.load %arg5[%c0_34, %c0_35] : memref<128x256xf32, #tpu.memory_space<vmem>>, vector<128x256xf32>
    %27 = arith.addf %26, %24 : vector<128x256xf32>
    %c0_36 = arith.constant 0 : index
    %c0_37 = arith.constant 0 : index
    %28 = vector.load %arg5[%c0_36, %c0_37] : memref<128x256xf32, #tpu.memory_space<vmem>>, vector<128x256xf32>
    tpu.vector_store %arg5[%c0_36, %c0_37], %27 {strides = array<i32>} : memref<128x256xf32, #tpu.memory_space<vmem>>, vector<128x256xf32>,
    %c0_38 = arith.constant 0 : index
    %c0_39 = arith.constant 0 : index
    %29 = vector.load %arg4[%c0_38, %c0_39] : memref<128x256xf32, #tpu.memory_space<vmem>>, vector<128x256xf32>
    %30 = arith.truncf %29 : vector<128x256xf32> to vector<128x256xbf16>
    %c0_40 = arith.constant 0 : index
    %c0_41 = arith.constant 0 : index
    %31 = vector.load %arg6[%c0_40, %c0_41] : memref<128x256xbf16, #tpu.memory_space<vmem>>, vector<128x256xbf16>
    tpu.vector_store %arg6[%c0_40, %c0_41], %30 {strides = array<i32>} : memref<128x256xbf16, #tpu.memory_space<vmem>>, vector<128x256xbf16>,
    %c0_42 = arith.constant 0 : index
    %c0_43 = arith.constant 0 : index
    %32 = vector.load %arg6[%c0_42, %c0_43] : memref<128x256xbf16, #tpu.memory_space<vmem>>, vector<128x256xbf16>
    %cst_44 = arith.constant dense<0.000000e+00> : vector<128x256xf32>
    %33 = tpu.matmul %0, %32, %cst_44 {dimension_numbers = #tpu.dot_dimension_numbers<[1], [0], [0], [1], [0, 0, 1, 1], [], []>} : vector<128x128xbf16>, vector<128x256xbf16>, vector<128x256xf32> -> vector<128x256xf32>
    %c0_45 = arith.constant 0 : index
    %c0_46 = arith.constant 0 : index
    %34 = vector.load %arg4[%c0_45, %c0_46] : memref<128x256xf32, #tpu.memory_space<vmem>>, vector<128x256xf32>
    %35 = arith.mulf %33, %34 : vector<128x256xf32>
    %36 = arith.addf %33, %35 : vector<128x256xf32>
    %c0_47 = arith.constant 0 : index
    %c0_48 = arith.constant 0 : index
    %37 = vector.load %arg4[%c0_47, %c0_48] : memref<128x256xf32, #tpu.memory_space<vmem>>, vector<128x256xf32>
    tpu.vector_store %arg4[%c0_47, %c0_48], %36 {strides = array<i32>} : memref<128x256xf32, #tpu.memory_space<vmem>>, vector<128x256xf32>,
    %c0_49 = arith.constant 0 : index
    %c0_50 = arith.constant 0 : index
    %38 = vector.load %arg5[%c0_49, %c0_50] : memref<128x256xf32, #tpu.memory_space<vmem>>, vector<128x256xf32>
    %39 = arith.addf %38, %36 : vector<128x256xf32>
    %c0_51 = arith.constant 0 : index
    %c0_52 = arith.constant 0 : index
    %40 = vector.load %arg5[%c0_51, %c0_52] : memref<128x256xf32, #tpu.memory_space<vmem>>, vector<128x256xf32>
    tpu.vector_store %arg5[%c0_51, %c0_52], %39 {strides = array<i32>} : memref<128x256xf32, #tpu.memory_space<vmem>>, vector<128x256xf32>,
    %c0_53 = arith.constant 0 : index
    %c0_54 = arith.constant 0 : index
    %41 = vector.load %arg5[%c0_53, %c0_54] : memref<128x256xf32, #tpu.memory_space<vmem>>, vector<128x256xf32>
    %cst_55 = arith.constant 2.500000e-01 : f32
    %42 = vector.broadcast %cst_55 : f32 to vector<128x256xf32>
    %43 = arith.mulf %41, %42 : vector<128x256xf32>
    %c0_56 = arith.constant 0 : index
    %c0_57 = arith.constant 0 : index
    %44 = vector.load %arg3[%c0_56, %c0_57] : memref<128x256xf32, #tpu.memory_space<vmem>>, vector<128x256xf32>
    tpu.vector_store %arg3[%c0_56, %c0_57], %43 {strides = array<i32>} : memref<128x256xf32, #tpu.memory_space<vmem>>, vector<128x256xf32>,
    return
  }
  func.func @transform_0(%arg0: i32) -> (i32, i32) {
    %c0_i32 = arith.constant 0 : i32
    %c0_i32_0 = arith.constant 0 : i32
    %c0_i32_1 = arith.constant 0 : i32
    return %c0_i32, %c0_i32_0 : i32, i32
  }
  func.func @transform_1(%arg0: i32) -> (i32, i32) {
    %c0_i32 = arith.constant 0 : i32
    %c0_i32_0 = arith.constant 0 : i32
    return %c0_i32, %arg0 : i32, i32
  }
  func.func @transform_2(%arg0: i32) -> (i32, i32) {
    %c0_i32 = arith.constant 0 : i32
    %c0_i32_0 = arith.constant 0 : i32
    return %c0_i32, %arg0 : i32, i32
  }
}

module attributes {stable_mosaic.version = 11 : i64} {
  func.func @_gnn_kernel(%arg0: i32, %arg1: memref<128x128xbf16, #tpu.memory_space<vmem>>, %arg2: memref<128x256xf32, #tpu.memory_space<vmem>>, %arg3: memref<128x256xf32, #tpu.memory_space<vmem>>, %arg4: memref<128x256xf32, #tpu.memory_space<vmem>>, %arg5: memref<128x256xf32, #tpu.memory_space<vmem>>, %arg6: memref<128x256xbf16, #tpu.memory_space<vmem>>) attributes {dimension_semantics = [#tpu.dimension_semantics<parallel>], iteration_bounds = array<i64: 1>, scalar_prefetch = 0 : i64, scratch_operands = 3 : i64, tpu.core_type = #tpu.core_type<tc>, window_params = [{pipeline_mode = #tpu.pipeline_mode<synchronous>, transform_indices = @transform_0, window_bounds = array<i64: 128, 128>}, {transform_indices = @transform_1, window_bounds = array<i64: 128, 256>}, {transform_indices = @transform_2, window_bounds = array<i64: 128, 256>}]} {
    %c0 = arith.constant 0 : index
    %c0_0 = arith.constant 0 : index
    %0 = vector.load %arg1[%c0, %c0_0] : memref<128x128xbf16, #tpu.memory_space<vmem>>, vector<128x128xbf16>
    %c0_1 = arith.constant 0 : index
    %c0_2 = arith.constant 0 : index
    %1 = vector.load %arg2[%c0_1, %c0_2] : memref<128x256xf32, #tpu.memory_space<vmem>>, vector<128x256xf32>
    %c0_3 = arith.constant 0 : index
    %c0_4 = arith.constant 0 : index
    %2 = vector.load %arg4[%c0_3, %c0_4] : memref<128x256xf32, #tpu.memory_space<vmem>>, vector<128x256xf32>
    tpu.vector_store %arg4[%c0_3, %c0_4], %1 {strides = array<i32>} : memref<128x256xf32, #tpu.memory_space<vmem>>, vector<128x256xf32>,
    %c0_5 = arith.constant 0 : index
    %c0_6 = arith.constant 0 : index
    %3 = vector.load %arg4[%c0_5, %c0_6] : memref<128x256xf32, #tpu.memory_space<vmem>>, vector<128x256xf32>
    %c0_7 = arith.constant 0 : index
    %c0_8 = arith.constant 0 : index
    %4 = vector.load %arg5[%c0_7, %c0_8] : memref<128x256xf32, #tpu.memory_space<vmem>>, vector<128x256xf32>
    tpu.vector_store %arg5[%c0_7, %c0_8], %3 {strides = array<i32>} : memref<128x256xf32, #tpu.memory_space<vmem>>, vector<128x256xf32>,
    %c0_9 = arith.constant 0 : index
    %c0_10 = arith.constant 0 : index
    %5 = vector.load %arg4[%c0_9, %c0_10] : memref<128x256xf32, #tpu.memory_space<vmem>>, vector<128x256xf32>
    %6 = arith.truncf %5 : vector<128x256xf32> to vector<128x256xbf16>
    %c0_11 = arith.constant 0 : index
    %c0_12 = arith.constant 0 : index
    %7 = vector.load %arg6[%c0_11, %c0_12] : memref<128x256xbf16, #tpu.memory_space<vmem>>, vector<128x256xbf16>
    tpu.vector_store %arg6[%c0_11, %c0_12], %6 {strides = array<i32>} : memref<128x256xbf16, #tpu.memory_space<vmem>>, vector<128x256xbf16>,
    %c0_13 = arith.constant 0 : index
    %c0_14 = arith.constant 0 : index
    %8 = vector.load %arg6[%c0_13, %c0_14] : memref<128x256xbf16, #tpu.memory_space<vmem>>, vector<128x256xbf16>
    %cst = arith.constant dense<0.000000e+00> : vector<128x256xf32>
    %9 = tpu.matmul %0, %8, %cst {dimension_numbers = #tpu.dot_dimension_numbers<[1], [0], [0], [1], [0, 0, 1, 1], [], []>} : vector<128x128xbf16>, vector<128x256xbf16>, vector<128x256xf32> -> vector<128x256xf32>
    %c0_15 = arith.constant 0 : index
    %c0_16 = arith.constant 0 : index
    %10 = vector.load %arg4[%c0_15, %c0_16] : memref<128x256xf32, #tpu.memory_space<vmem>>, vector<128x256xf32>
    %11 = arith.mulf %9, %10 : vector<128x256xf32>
    %12 = arith.addf %9, %11 : vector<128x256xf32>
    %c0_17 = arith.constant 0 : index
    %c0_18 = arith.constant 0 : index
    %13 = vector.load %arg4[%c0_17, %c0_18] : memref<128x256xf32, #tpu.memory_space<vmem>>, vector<128x256xf32>
    tpu.vector_store %arg4[%c0_17, %c0_18], %12 {strides = array<i32>} : memref<128x256xf32, #tpu.memory_space<vmem>>, vector<128x256xf32>,
    %c0_19 = arith.constant 0 : index
    %c0_20 = arith.constant 0 : index
    %14 = vector.load %arg5[%c0_19, %c0_20] : memref<128x256xf32, #tpu.memory_space<vmem>>, vector<128x256xf32>
    %15 = arith.addf %14, %12 : vector<128x256xf32>
    %c0_21 = arith.constant 0 : index
    %c0_22 = arith.constant 0 : index
    %16 = vector.load %arg5[%c0_21, %c0_22] : memref<128x256xf32, #tpu.memory_space<vmem>>, vector<128x256xf32>
    tpu.vector_store %arg5[%c0_21, %c0_22], %15 {strides = array<i32>} : memref<128x256xf32, #tpu.memory_space<vmem>>, vector<128x256xf32>,
    %c0_23 = arith.constant 0 : index
    %c0_24 = arith.constant 0 : index
    %17 = vector.load %arg4[%c0_23, %c0_24] : memref<128x256xf32, #tpu.memory_space<vmem>>, vector<128x256xf32>
    %18 = arith.truncf %17 : vector<128x256xf32> to vector<128x256xbf16>
    %c0_25 = arith.constant 0 : index
    %c0_26 = arith.constant 0 : index
    %19 = vector.load %arg6[%c0_25, %c0_26] : memref<128x256xbf16, #tpu.memory_space<vmem>>, vector<128x256xbf16>
    tpu.vector_store %arg6[%c0_25, %c0_26], %18 {strides = array<i32>} : memref<128x256xbf16, #tpu.memory_space<vmem>>, vector<128x256xbf16>,
    %c0_27 = arith.constant 0 : index
    %c0_28 = arith.constant 0 : index
    %20 = vector.load %arg6[%c0_27, %c0_28] : memref<128x256xbf16, #tpu.memory_space<vmem>>, vector<128x256xbf16>
    %cst_29 = arith.constant dense<0.000000e+00> : vector<128x256xf32>
    %21 = tpu.matmul %0, %20, %cst_29 {dimension_numbers = #tpu.dot_dimension_numbers<[1], [0], [0], [1], [0, 0, 1, 1], [], []>} : vector<128x128xbf16>, vector<128x256xbf16>, vector<128x256xf32> -> vector<128x256xf32>
    %c0_30 = arith.constant 0 : index
    %c0_31 = arith.constant 0 : index
    %22 = vector.load %arg4[%c0_30, %c0_31] : memref<128x256xf32, #tpu.memory_space<vmem>>, vector<128x256xf32>
    %23 = arith.mulf %21, %22 : vector<128x256xf32>
    %24 = arith.addf %21, %23 : vector<128x256xf32>
    %c0_32 = arith.constant 0 : index
    %c0_33 = arith.constant 0 : index
    %25 = vector.load %arg4[%c0_32, %c0_33] : memref<128x256xf32, #tpu.memory_space<vmem>>, vector<128x256xf32>
    tpu.vector_store %arg4[%c0_32, %c0_33], %24 {strides = array<i32>} : memref<128x256xf32, #tpu.memory_space<vmem>>, vector<128x256xf32>,
    %c0_34 = arith.constant 0 : index
    %c0_35 = arith.constant 0 : index
    %26 = vector.load %arg5[%c0_34, %c0_35] : memref<128x256xf32, #tpu.memory_space<vmem>>, vector<128x256xf32>
    %27 = arith.addf %26, %24 : vector<128x256xf32>
    %c0_36 = arith.constant 0 : index
    %c0_37 = arith.constant 0 : index
    %28 = vector.load %arg5[%c0_36, %c0_37] : memref<128x256xf32, #tpu.memory_space<vmem>>, vector<128x256xf32>
    tpu.vector_store %arg5[%c0_36, %c0_37], %27 {strides = array<i32>} : memref<128x256xf32, #tpu.memory_space<vmem>>, vector<128x256xf32>,
    %c0_38 = arith.constant 0 : index
    %c0_39 = arith.constant 0 : index
    %29 = vector.load %arg4[%c0_38, %c0_39] : memref<128x256xf32, #tpu.memory_space<vmem>>, vector<128x256xf32>
    %30 = arith.truncf %29 : vector<128x256xf32> to vector<128x256xbf16>
    %c0_40 = arith.constant 0 : index
    %c0_41 = arith.constant 0 : index
    %31 = vector.load %arg6[%c0_40, %c0_41] : memref<128x256xbf16, #tpu.memory_space<vmem>>, vector<128x256xbf16>
    tpu.vector_store %arg6[%c0_40, %c0_41], %30 {strides = array<i32>} : memref<128x256xbf16, #tpu.memory_space<vmem>>, vector<128x256xbf16>,
    %c0_42 = arith.constant 0 : index
    %c0_43 = arith.constant 0 : index
    %32 = vector.load %arg6[%c0_42, %c0_43] : memref<128x256xbf16, #tpu.memory_space<vmem>>, vector<128x256xbf16>
    %cst_44 = arith.constant dense<0.000000e+00> : vector<128x256xf32>
    %33 = tpu.matmul %0, %32, %cst_44 {dimension_numbers = #tpu.dot_dimension_numbers<[1], [0], [0], [1], [0, 0, 1, 1], [], []>} : vector<128x128xbf16>, vector<128x256xbf16>, vector<128x256xf32> -> vector<128x256xf32>
    %c0_45 = arith.constant 0 : index
    %c0_46 = arith.constant 0 : index
    %34 = vector.load %arg4[%c0_45, %c0_46] : memref<128x256xf32, #tpu.memory_space<vmem>>, vector<128x256xf32>
    %35 = arith.mulf %33, %34 : vector<128x256xf32>
    %36 = arith.addf %33, %35 : vector<128x256xf32>
    %c0_47 = arith.constant 0 : index
    %c0_48 = arith.constant 0 : index
    %37 = vector.load %arg4[%c0_47, %c0_48] : memref<128x256xf32, #tpu.memory_space<vmem>>, vector<128x256xf32>
    tpu.vector_store %arg4[%c0_47, %c0_48], %36 {strides = array<i32>} : memref<128x256xf32, #tpu.memory_space<vmem>>, vector<128x256xf32>,
    %c0_49 = arith.constant 0 : index
    %c0_50 = arith.constant 0 : index
    %38 = vector.load %arg5[%c0_49, %c0_50] : memref<128x256xf32, #tpu.memory_space<vmem>>, vector<128x256xf32>
    %39 = arith.addf %38, %36 : vector<128x256xf32>
    %c0_51 = arith.constant 0 : index
    %c0_52 = arith.constant 0 : index
    %40 = vector.load %arg5[%c0_51, %c0_52] : memref<128x256xf32, #tpu.memory_space<vmem>>, vector<128x256xf32>
    tpu.vector_store %arg5[%c0_51, %c0_52], %39 {strides = array<i32>} : memref<128x256xf32, #tpu.memory_space<vmem>>, vector<128x256xf32>,
    %c0_53 = arith.constant 0 : index
    %c0_54 = arith.constant 0 : index
    %41 = vector.load %arg5[%c0_53, %c0_54] : memref<128x256xf32, #tpu.memory_space<vmem>>, vector<128x256xf32>
    %cst_55 = arith.constant 2.500000e-01 : f32
    %42 = vector.broadcast %cst_55 : f32 to vector<128x256xf32>
    %43 = arith.mulf %41, %42 : vector<128x256xf32>
    %c0_56 = arith.constant 0 : index
    %c0_57 = arith.constant 0 : index
    %44 = vector.load %arg3[%c0_56, %c0_57] : memref<128x256xf32, #tpu.memory_space<vmem>>, vector<128x256xf32>
    tpu.vector_store %arg3[%c0_56, %c0_57], %43 {strides = array<i32>} : memref<128x256xf32, #tpu.memory_space<vmem>>, vector<128x256xf32>,
    return
  }
  func.func @transform_0(%arg0: i32) -> (i32, i32) {
    %c0_i32 = arith.constant 0 : i32
    %c0_i32_0 = arith.constant 0 : i32
    %c0_i32_1 = arith.constant 0 : i32
    return %c0_i32, %c0_i32_0 : i32, i32
  }
  func.func @transform_1(%arg0: i32) -> (i32, i32) {
    %c0_i32 = arith.constant 0 : i32
    %c0_i32_0 = arith.constant 0 : i32
    return %c0_i32, %arg0 : i32, i32
  }
  func.func @transform_2(%arg0: i32) -> (i32, i32) {
    %c0_i32 = arith.constant 0 : i32
    %c0_i32_0 = arith.constant 0 : i32
    return %c0_i32, %arg0 : i32, i32
  }
}

</mosaic_0001>

<bundles_post_ra>
// kernel: tpu_custom_call.1
= control target key start
LH: loop header
LB: loop body
LE: loop exit
PB: predicated region body
PF: predicated region fallthrough
CT: control target
= control target key end

     0   :  { %7 = vsyncpa [#allocation6], 0  ;;  %s2363_s0 = inlined_call_operand.hbm [shape: bf16[128,128], index: 0, kind: input, shape index: {}]   ;;  %s2364_s1 = inlined_call_operand.hbm [shape: f32[128,256], index: 1, kind: input, shape index: {}]   ;;  %s2365_s2 = inlined_call_operand.hbm [shape: f32[128,256], index: 2, kind: output, shape index: {}]  }
   0x1   :  { %8 = vsyncpa [#allocation9], 0 }
   0x2   :  { %9 = vsyncpa [#allocation7], 0  ;;  %s1720_s9 = smov [#allocation5]   ;;  %s1648_s13 = scalar_lea.hbm %s2363_s0, 1024 }
   0x3   :  { %s15_s10 = sshll.u32 %s1720_s9, 4  ;;  %p1649_p0 = scmp.ne.s32.totalorder %s2363_s0, %s1648_s13  ;;  %s16_s10 = int_to_ptr.vmem [resolvable:$true] %s15_s10 }
   0x4   :  { %p1652_p1 = scmp.lt.u32.totalorder %s1648_s13, %s2363_s0 }
   0x6   :  { %p1654_p2 = pnand %p1652_p1, %p1649_p0 }
   0x8   :  { %1657 = shalt.err (!%p1654_p2)
}
   0x9   :  { %s1658_s18 = scalar_lea.vmem %s16_s10, 1024  ;;  %p1663_p4 = scmp.lt.s32.totalorder %s16_s10, %s16_s10 }
   0xa   :  { %p1659_p3 = scmp.ne.s32.totalorder %s16_s10, %s1658_s18  ;;  %p1664_p5 = scmp.lt.s32.totalorder %s1658_s18, %s1658_s18 }
   0xc   :  { %p1665_p6 = por %p1664_p5, %p1663_p4 }
   0xe   :  { %p1666_p7 = pnand %p1665_p6, %p1659_p3 }
  0x10   :  { %1669 = shalt.err (!%p1666_p7)
}
  0x11   :  { %s1721_s19 = smov 64   ;;  %s1722_s20 = smov 4  }
  0x12   :  { %21 = dma.hbm_to_vmem [thread:$0]  %s2363_s0, 1024, %s16_s10, [#allocation6], %s1721_s19, %s1721_s19, %s1722_s20  }
  0x13   :  { %s1723_s23 = smov [#allocation8]   ;;  %s1670_s27 = scalar_lea.hbm %s2364_s1, 4096 }
  0x14   :  { %s27_s24 = sshll.u32 %s1723_s23, 4  ;;  %p1671_p8 = scmp.ne.s32.totalorder %s2364_s1, %s1670_s27  ;;  %s28_s24 = int_to_ptr.vmem [resolvable:$true] %s27_s24 }
  0x15   :  { %p1674_p9 = scmp.lt.u32.totalorder %s1670_s27, %s2364_s1 }
  0x17   :  { %p1676_p10 = pnand %p1674_p9, %p1671_p8 }
  0x19   :  { %1679 = shalt.err (!%p1676_p10)
}
  0x1a   :  { %s1680_s4 = scalar_lea.vmem %s28_s24, 4096  ;;  %p1685_p12 = scmp.lt.s32.totalorder %s28_s24, %s28_s24 }
  0x1b   :  { %p1681_p11 = scmp.ne.s32.totalorder %s28_s24, %s1680_s4  ;;  %p1686_p13 = scmp.lt.s32.totalorder %s1680_s4, %s1680_s4 }
  0x1d   :  { %p1687_p0 = por %p1686_p13, %p1685_p12 }
  0x1f   :  { %p1688_p1 = pnand %p1687_p0, %p1681_p11 }
  0x21   :  { %1691 = shalt.err (!%p1688_p1)
}
  0x22   :  { %s1724_s0 = smov 256   ;;  %s1725_s5 = smov 16  }
  0x23   :  { %33 = dma.hbm_to_vmem [thread:$0]  %s2364_s1, 4096, %s28_s24, [#allocation9], %s1724_s0, %s1724_s0, %s1725_s5  }
  0x24   :  { %1714 = dma.done.wait [#allocation6], 1024  }
  0x25   :  { %1715 = vsyncadd [#allocation6], 4294966272 }
  0x26   :  { %1716 = dma.done.wait [#allocation9], 4096  }
  0x27   :  { %1717 = vsyncadd [#allocation9], 4294963200  ;;  %v2366_v0 = vmov 0   ;;  %v1772_v1 = vld [vmem:[#allocation8 + $0x8] sm:$0xff]  ;;  %v1774_v2 = vld [vmem:[#allocation8 + $0x18] sm:$0xff]  ;;  %s1727_s1 = smov [#allocation10]  }
  0x28   :  { %345 = vmatprep.mubr.bf16.mxu0 %v2366_v0  ;;  %385 = vmatprep.mubr.bf16.mxu1 %v2366_v0  ;;  %2426 = vst [vmem:[#allocation14_spill] sm:$0xff] %v1772_v1  ;;  %2427 = vst [vmem:[#allocation15_spill] sm:$0xff] %v1774_v2  ;;  %v1776_v3 = vld [vmem:[#allocation8] sm:$0xff]  ;;  %v218_v4 = vpack.c.bf16 %v1774_v2, %v1772_v1  ;;  %v1780_v5 = vld [vmem:[#allocation8 + $0x10] sm:$0xff]  ;;  %s1585_s8 = sshll.u32 %s1727_s1, 4  ;;  %s1586_s8 = int_to_ptr.vmem [resolvable:$true] %s1585_s8 }
  0x29   :  { %2428 = vst [vmem:[#allocation16_spill] sm:$0xff] %v1776_v3  ;;  %2429 = vst [vmem:[#allocation17_spill] sm:$0xff] %v1780_v5  ;;  %v1782_v6 = vld [vmem:[#allocation8 + $0x28] sm:$0xff]  ;;  %v1784_v7 = vld [vmem:[#allocation8 + $0x38] sm:$0xff]  ;;  %v217_v8 = vpack.c.bf16 %v1780_v5, %v1776_v3  ;;  %s1692_s9 = scalar_lea.vmem %s1586_s8, 4096  ;;  %p1697_p3 = scmp.lt.s32.totalorder %s1586_s8, %s1586_s8 }
  0x2a   :  { %2430 = vst [vmem:[#allocation18_spill] sm:$0xff] %v1782_v6  ;;  %2431 = vst [vmem:[#allocation19_spill] sm:$0xff] %v1784_v7  ;;  %v220_v9 = vpack.c.bf16 %v1784_v7, %v1782_v6  ;;  %v1790_v10 = vld [vmem:[#allocation8 + $0x20] sm:$0xff]  ;;  %v1792_v11 = vld [vmem:[#allocation8 + $0x30] sm:$0xff]  ;;  %313 = vmatprep.subr.bf16.mxu0 %v218_v4  ;;  %1606 = vmatprep.subr.bf16.mxu1 %v218_v4  ;;  %p1693_p2 = scmp.ne.s32.totalorder %s1586_s8, %s1692_s9  ;;  %p1698_p4 = scmp.lt.s32.totalorder %s1692_s9, %s1692_s9 }
  0x2b   :  { %2432 = vst [vmem:[#allocation20_spill] sm:$0xff] %v1790_v10  ;;  %2433 = vst [vmem:[#allocation21_spill] sm:$0xff] %v1792_v11  ;;  %v1794_v12 = vld [vmem:[#allocation8 + $0x48] sm:$0xff]  ;;  %v1796_v13 = vld [vmem:[#allocation8 + $0x58] sm:$0xff]  ;;  %314 = vmatpush1.bf16.msra.mxu0 %v217_v8  ;;  %v219_v14 = vpack.c.bf16 %v1792_v11, %v1790_v10  ;;  %1614 = vmatpush1.bf16.msra.mxu1 %v217_v8 }
  0x2c   :  { %2434 = vst [vmem:[#allocation22_spill] sm:$0xff] %v1794_v12  ;;  %2435 = vst [vmem:[#allocation23_spill] sm:$0xff] %v1796_v13  ;;  %315 = vmatprep.subr.bf16.mxu0 %v220_v9  ;;  %v222_v15 = vpack.c.bf16 %v1796_v13, %v1794_v12  ;;  %v1802_v16 = vld [vmem:[#allocation8 + $0x40] sm:$0xff]  ;;  %v1804_v17 = vld [vmem:[#allocation8 + $0x50] sm:$0xff]  ;;  %1607 = vmatprep.subr.bf16.mxu1 %v220_v9  ;;  %p1699_p5 = por %p1698_p4, %p1697_p3 }
  0x2d   :  { %2436 = vst [vmem:[#allocation24_spill] sm:$0xff] %v1802_v16  ;;  %2437 = vst [vmem:[#allocation25_spill] sm:$0xff] %v1804_v17  ;;  %v1806_v18 = vld [vmem:[#allocation8 + $0x68] sm:$0xff]  ;;  %v1808_v19 = vld [vmem:[#allocation8 + $0x78] sm:$0xff]  ;;  %v221_v20 = vpack.c.bf16 %v1804_v17, %v1802_v16 }
  0x2e   :  { %2438 = vst [vmem:[#allocation26_spill] sm:$0xff] %v1806_v18  ;;  %2439 = vst [vmem:[#allocation27_spill] sm:$0xff] %v1808_v19  ;;  %v224_v21 = vpack.c.bf16 %v1808_v19, %v1806_v18  ;;  %v1814_v22 = vld [vmem:[#allocation8 + $0x60] sm:$0xff]  ;;  %v1816_v23 = vld [vmem:[#allocation8 + $0x70] sm:$0xff]  ;;  %p1700_p6 = pnand %p1699_p5, %p1693_p2 }
  0x2f   :  { %316 = vmatpush1.bf16.msra.mxu0 %v219_v14  ;;  %1615 = vmatpush1.bf16.msra.mxu1 %v219_v14  ;;  %2440 = vst [vmem:[#allocation28_spill] sm:$0xff] %v1814_v22  ;;  %2441 = vst [vmem:[#allocation29_spill] sm:$0xff] %v1816_v23  ;;  %v1818_v24 = vld [vmem:[#allocation8 + $0x88] sm:$0xff]  ;;  %v1820_v25 = vld [vmem:[#allocation8 + $0x98] sm:$0xff]  ;;  %v223_v27 = vpack.c.bf16 %v1816_v23, %v1814_v22 }
  0x30   :  { %317 = vmatprep.subr.bf16.mxu0 %v222_v15  ;;  %1608 = vmatprep.subr.bf16.mxu1 %v222_v15  ;;  %2442 = vst [vmem:[#allocation30_spill] sm:$0xff] %v1818_v24  ;;  %2443 = vst [vmem:[#allocation31_spill] sm:$0xff] %v1820_v25  ;;  %v1822_v26 = vld [vmem:[#allocation8 + $0x80] sm:$0xff]  ;;  %v1826_v28 = vld [vmem:[#allocation8 + $0x90] sm:$0xff]  ;;  %v226_v29 = vpack.c.bf16 %v1820_v25, %v1818_v24 }
  0x31   :  { %2444 = vst [vmem:[#allocation32_spill] sm:$0xff] %v1822_v26  ;;  %2445 = vst [vmem:[#allocation33_spill] sm:$0xff] %v1826_v28  ;;  %v1830_v30 = vld [vmem:[#allocation8 + $0xa8] sm:$0xff]  ;;  %v1832_v31 = vld [vmem:[#allocation8 + $0xb8] sm:$0xff]  ;;  %v225_v32 = vpack.c.bf16 %v1826_v28, %v1822_v26 }
  0x32   :  { %v1836_v33 = vld [vmem:[#allocation8 + $0xa0] sm:$0xff]  ;;  %v228_v34 = vpack.c.bf16 %v1832_v31, %v1830_v30  ;;  %v1840_v35 = vld [vmem:[#allocation8 + $0xb0] sm:$0xff]  ;;  %v1842_v36 = vld [vmem:[#allocation8 + $0xc8] sm:$0xff] }
  0x33   :  { %318 = vmatpush1.bf16.msra.mxu0 %v221_v20  ;;  %1616 = vmatpush1.bf16.msra.mxu1 %v221_v20  ;;  %2446 = vst [vmem:[#allocation34_spill] sm:$0xff] %v1836_v33  ;;  %2447 = vst [vmem:[#allocation35_spill] sm:$0xff] %v1840_v35  ;;  %v1844_v37 = vld [vmem:[#allocation8 + $0xd8] sm:$0xff]  ;;  %v227_v38 = vpack.c.bf16 %v1840_v35, %v1836_v33  ;;  %v1850_v40 = vld [vmem:[#allocation8 + $0xc0] sm:$0xff] }
  0x34   :  { %319 = vmatprep.subr.bf16.mxu0 %v224_v21  ;;  %1609 = vmatprep.subr.bf16.mxu1 %v224_v21  ;;  %v230_v39 = vpack.c.bf16 %v1844_v37, %v1842_v36  ;;  %v1852_v41 = vld [vmem:[#allocation8 + $0xd0] sm:$0xff]  ;;  %v1854_v42 = vld [vmem:[#allocation8 + $0xe8] sm:$0xff]  ;;  %v1856_v43 = vld [vmem:[#allocation8 + $0xf8] sm:$0xff] }
  0x35   :  { %v229_v44 = vpack.c.bf16 %v1852_v41, %v1850_v40  ;;  %v232_v45 = vpack.c.bf16 %v1856_v43, %v1854_v42  ;;  %v1862_v46 = vld [vmem:[#allocation8 + $0xe0] sm:$0xff]  ;;  %v1864_v47 = vld [vmem:[#allocation8 + $0xf0] sm:$0xff]  ;;  %v1876_v51 = vld [vmem:[#allocation5 + $0x8] sm:$0xff]  }
  0x36   :  { %v231_v48 = vpack.c.bf16 %v1864_v47, %v1862_v46  ;;  %v1868_v49 = vld [vmem:[#allocation5] sm:$0xff]   ;;  %v1878_v52 = vld [vmem:[#allocation5 + $0x28] sm:$0xff]   ;;  %v1884_v53 = vld [vmem:[#allocation5 + $0x10] sm:$0xff]  }
  0x37   :  { %320 = vmatpush1.bf16.msra.mxu0 %v223_v27  ;;  %1617 = vmatpush1.bf16.msra.mxu1 %v223_v27  ;;  %v1870_v50 = vld [vmem:[#allocation5 + $0x20] sm:$0xff]   ;;  %v1886_v54 = vld [vmem:[#allocation5 + $0x30] sm:$0xff]   ;;  %v1892_v55 = vld [vmem:[#allocation5 + $0x18] sm:$0xff]  }
  0x38   :  { %321 = vmatprep.subr.bf16.mxu0 %v226_v29  ;;  %1610 = vmatprep.subr.bf16.mxu1 %v226_v29  ;;  %v1894_v56 = vld [vmem:[#allocation5 + $0x38] sm:$0xff]  }
  0x3b   :  { %322 = vmatpush1.bf16.msra.mxu0 %v225_v32  ;;  %1618 = vmatpush1.bf16.msra.mxu1 %v225_v32 }
  0x3c   :  { %323 = vmatprep.subr.bf16.mxu0 %v228_v34  ;;  %1611 = vmatprep.subr.bf16.mxu1 %v228_v34 }
  0x3f   :  { %324 = vmatpush1.bf16.msra.mxu0 %v227_v38  ;;  %1619 = vmatpush1.bf16.msra.mxu1 %v227_v38 }
  0x40   :  { %325 = vmatprep.subr.bf16.mxu0 %v230_v39  ;;  %1612 = vmatprep.subr.bf16.mxu1 %v230_v39 }
  0x43   :  { %326 = vmatpush1.bf16.msra.mxu0 %v229_v44  ;;  %1620 = vmatpush1.bf16.msra.mxu1 %v229_v44 }
  0x44   :  { %327 = vmatprep.subr.bf16.mxu0 %v232_v45  ;;  %1613 = vmatprep.subr.bf16.mxu1 %v232_v45 }
  0x47   :  { %328 = vmatpush1.bf16.msra.mxu0 %v231_v48  ;;  %1621 = vmatpush1.bf16.msra.mxu1 %v231_v48 }
  0x4a   :  { %346 = vmatmul.mubr.bf16.vlgmr.msra.gmra.mrb[0].mxu0 %v1868_v49  ;;  %386 = vmatmul.mubr.bf16.vlgmr.msra.gmra.mrb[0].mxu1 %v1870_v50 }
  0x4b   :  { %355 = vmatprep.mubr.bf16.mxu0 %v2366_v0  ;;  %395 = vmatprep.mubr.bf16.mxu1 %v2366_v0 }
  0x52   :  { %356 = vmatmul.mubr.bf16.gmra.mrb[4].mxu0 %v1876_v51  ;;  %396 = vmatmul.mubr.bf16.gmra.mrb[4].mxu1 %v1878_v52 }
  0x53   :  { %365 = vmatprep.mubr.bf16.mxu0 %v2366_v0  ;;  %405 = vmatprep.mubr.bf16.mxu1 %v2366_v0 }
  0x5a   :  { %366 = vmatmul.mubr.bf16.gmra.mrb[8].mxu0 %v1884_v53  ;;  %406 = vmatmul.mubr.bf16.gmra.mrb[8].mxu1 %v1886_v54 }
  0x5b   :  { %375 = vmatprep.mubr.bf16.mxu0 %v2366_v0  ;;  %415 = vmatprep.mubr.bf16.mxu1 %v2366_v0 }
  0x62   :  { %376 = vmatmul.mubr.bf16.gmra.mrb[12].mxu0 %v1892_v55  ;;  %416 = vmatmul.mubr.bf16.gmra.mrb[12].mxu1 %v1894_v56 }
  0x63   :  { %762 = vmatprep.mubr.bf16.mxu1 %v2366_v0  ;;  %1179 = vmatprep.mubr.bf16.mxu0 %v2366_v0 }
 0x11d   :  { %v347_v57 = vpop.f32.mrb[0].mxu0  ;;  %v1900_v58 = vpop.f32.mrb[0].mxu1 }
 0x11e   :  { %v349_v59 = vpop.f32.mrb[1].mxu0  ;;  %v1902_v60 = vpop.f32.mrb[1].mxu1  ;;  %v458_v4 = vmul.f32 %v347_v57, %v1776_v3 }
 0x11f   :  { %v459_v61 = vmul.f32 %v349_v59, %v1772_v1  ;;  %v351_v62 = vpop.f32.mrb[2].mxu0  ;;  %v1905_v63 = vpop.f32.mrb[2].mxu1 }
 0x120   :  { %v460_v8 = vmul.f32 %v351_v62, %v1780_v5  ;;  %v353_v9 = vpop.f32.mrb[3].mxu0  ;;  %v1909_v14 = vpop.f32.mrb[3].mxu1  ;;  %v1918_v29 = vadd.f32 %v458_v4, %v347_v57 }
 0x121   :  { %v461_v15 = vmul.f32 %v353_v9, %v1774_v2  ;;  %v1914_v21 = vadd.f32 %v459_v61, %v349_v59 }
 0x122   :  { %v1912_v20 = vadd.f32 %v460_v8, %v351_v62 }
 0x123   :  { %v1916_v27 = vadd.f32 %v461_v15, %v353_v9 }
 0x124   :  { %v682_v39 = vpack.c.bf16 %v1912_v20, %v1918_v29 }
 0x125   :  { %v357_v32 = vpop.f32.mrb[4].mxu0  ;;  %v683_v34 = vpack.c.bf16 %v1916_v27, %v1914_v21  ;;  %v1922_v38 = vpop.f32.mrb[4].mxu1 }
 0x126   :  { %v359_v44 = vpop.f32.mrb[5].mxu0  ;;  %v1926_v45 = vpop.f32.mrb[5].mxu1  ;;  %v462_v57 = vmul.f32 %v357_v32, %v1790_v10 }
 0x127   :  { %v463_v48 = vmul.f32 %v359_v44, %v1782_v6  ;;  %v361_v59 = vpop.f32.mrb[6].mxu0  ;;  %730 = vmatprep.subr.bf16.mxu1 %v683_v34  ;;  %v1929_v61 = vpop.f32.mrb[6].mxu1 }
 0x128   :  { %v464_v62 = vmul.f32 %v361_v59, %v1792_v11  ;;  %v363_v4 = vpop.f32.mrb[7].mxu0  ;;  %731 = vmatpush1.bf16.msra.mxu1 %v682_v39  ;;  %v403_v8 = vpop.f32.mrb[7].mxu1  ;;  %v1940_v6 = vadd.f32 %v462_v57, %v357_v32 }
 0x129   :  { %v465_v9 = vmul.f32 %v363_v4, %v1784_v7  ;;  %v1936_v0 = vadd.f32 %v463_v48, %v359_v44 }
 0x12a   :  { %v1934_v15 = vadd.f32 %v464_v62, %v361_v59  ;;  %2450 = vst [vmem:[#allocation38_spill] sm:$0xff] %v1940_v6 }
 0x12b   :  { %v1938_v2 = vadd.f32 %v465_v9, %v363_v4 }
 0x12c   :  { %2448 = vst [vmem:[#allocation36_spill] sm:$0xff] %v1934_v15  ;;  %v684_v39 = vpack.c.bf16 %v1934_v15, %v1940_v6 }
 0x12d   :  { %2449 = vst [vmem:[#allocation37_spill] sm:$0xff] %v1938_v2  ;;  %v367_v34 = vpop.f32.mrb[8].mxu0  ;;  %v685_v5 = vpack.c.bf16 %v1938_v2, %v1936_v0  ;;  %v1944_v10 = vpop.f32.mrb[8].mxu1 }
 0x12e   :  { %v369_v11 = vpop.f32.mrb[9].mxu0  ;;  %v1948_v1 = vpop.f32.mrb[9].mxu1  ;;  %v466_v32 = vmul.f32 %v367_v34, %v1802_v16 }
 0x12f   :  { %v467_v59 = vmul.f32 %v369_v11, %v1794_v12  ;;  %v371_v44 = vpop.f32.mrb[10].mxu0  ;;  %732 = vmatprep.subr.bf16.mxu1 %v685_v5  ;;  %v1951_v48 = vpop.f32.mrb[10].mxu1 }
 0x130   :  { %v468_v57 = vmul.f32 %v371_v44, %v1804_v17  ;;  %v373_v62 = vpop.f32.mrb[11].mxu0  ;;  %733 = vmatpush1.bf16.msra.mxu1 %v684_v39  ;;  %v413_v4 = vpop.f32.mrb[11].mxu1  ;;  %v1962_v12 = vadd.f32 %v466_v32, %v367_v34 }
 0x131   :  { %v469_v9 = vmul.f32 %v373_v62, %v1796_v13  ;;  %v1958_v3 = vadd.f32 %v467_v59, %v369_v11  ;;  %v477_v11 = vmul.f32 %v1909_v14, %v1820_v25  ;;  %v476_v25 = vmul.f32 %v1905_v63, %v1826_v28 }
 0x132   :  { %v1956_v7 = vadd.f32 %v468_v57, %v371_v44  ;;  %2454 = vst [vmem:[#allocation42_spill] sm:$0xff] %v1962_v12  ;;  %v475_v44 = vmul.f32 %v1902_v60, %v1818_v24 }
 0x133   :  { %2452 = vst [vmem:[#allocation40_spill] sm:$0xff] %v1958_v3  ;;  %v1960_v2 = vadd.f32 %v469_v9, %v373_v62 }
 0x134   :  { %2451 = vst [vmem:[#allocation39_spill] sm:$0xff] %v1956_v7  ;;  %v686_v39 = vpack.c.bf16 %v1956_v7, %v1962_v12 }
 0x135   :  { %2453 = vst [vmem:[#allocation41_spill] sm:$0xff] %v1960_v2  ;;  %v377_v5 = vpop.f32.mrb[12].mxu0  ;;  %v687_v15 = vpack.c.bf16 %v1960_v2, %v1958_v3  ;;  %v1966_v16 = vpop.f32.mrb[12].mxu1  ;;  %v474_v2 = vmul.f32 %v1900_v58, %v1822_v26 }
 0x136   :  { %v379_v17 = vpop.f32.mrb[13].mxu0  ;;  %v419_v6 = vpop.f32.mrb[13].mxu1  ;;  %v470_v57 = vmul.f32 %v377_v5, %v1814_v22 }
 0x137   :  { %v471_v34 = vmul.f32 %v379_v17, %v1806_v18  ;;  %v381_v59 = vpop.f32.mrb[14].mxu0  ;;  %734 = vmatprep.subr.bf16.mxu1 %v687_v15  ;;  %v421_v32 = vpop.f32.mrb[14].mxu1  ;;  %v479_v18 = vmul.f32 %v1926_v45, %v1830_v30  ;;  %v481_v15 = vmul.f32 %v403_v8, %v1832_v31  ;;  %v2000_v28 = vadd.f32 %v474_v2, %v1900_v58 }
 0x138   :  { %v472_v62 = vmul.f32 %v381_v59, %v1816_v23  ;;  %v383_v9 = vpop.f32.mrb[15].mxu0  ;;  %735 = vmatpush1.bf16.msra.mxu1 %v686_v39  ;;  %v423_v13 = vpop.f32.mrb[15].mxu1  ;;  %v1988_v23 = vadd.f32 %v475_v44, %v1902_v60  ;;  %v1991_v39 = vadd.f32 %v477_v11, %v1909_v14  ;;  %v478_v30 = vmul.f32 %v1922_v38, %v1836_v33 }
 0x139   :  { %v473_v24 = vmul.f32 %v383_v9, %v1808_v19  ;;  %v1993_v22 = vadd.f32 %v471_v34, %v379_v17  ;;  %v1997_v19 = vadd.f32 %v470_v57, %v377_v5  ;;  %2459 = vst [vmem:[#allocation47_spill] sm:$0xff] %v2000_v28  ;;  %v480_v31 = vmul.f32 %v1929_v61, %v1840_v35 }
 0x13a   :  { %v1985_v7 = vadd.f32 %v472_v62, %v381_v59  ;;  %2456 = vst [vmem:[#allocation44_spill] sm:$0xff] %v1988_v23  ;;  %v2009_v14 = vadd.f32 %v476_v25, %v1905_v63  ;;  %v2012_v17 = vadd.f32 %v479_v18, %v1926_v45  ;;  %v483_v58 = vmul.f32 %v1948_v1, %v1842_v36 }
 0x13b   :  { %2457 = vst [vmem:[#allocation45_spill] sm:$0xff] %v1993_v22  ;;  %v1995_v26 = vadd.f32 %v473_v24, %v383_v9  ;;  %2458 = vst [vmem:[#allocation46_spill] sm:$0xff] %v1997_v19  ;;  %v2014_v24 = vadd.f32 %v481_v15, %v403_v8  ;;  %v485_v5 = vmul.f32 %v413_v4, %v1844_v37 }
 0x13c   :  { %2455 = vst [vmem:[#allocation43_spill] sm:$0xff] %v1985_v7  ;;  %2460 = vst [vmem:[#allocation48_spill] sm:$0xff] %v2009_v14  ;;  %v688_v2 = vpack.c.bf16 %v1985_v7, %v1997_v19  ;;  %v691_v44 = vpack.c.bf16 %v1991_v39, %v1988_v23  ;;  %v2024_v25 = vadd.f32 %v478_v30, %v1922_v38 }
 0x13d   :  { %v689_v60 = vpack.c.bf16 %v1995_v26, %v1993_v22  ;;  %2461 = vst [vmem:[#allocation49_spill] sm:$0xff] %v2012_v17  ;;  %v2027_v18 = vadd.f32 %v480_v31, %v1929_v61  ;;  %v690_v63 = vpack.c.bf16 %v2009_v14, %v2000_v28  ;;  %v482_v36 = vmul.f32 %v1944_v10, %v1850_v40 }
 0x13e   :  { %2462 = vst [vmem:[#allocation50_spill] sm:$0xff] %v2024_v25  ;;  %v484_v37 = vmul.f32 %v1951_v48, %v1852_v41  ;;  %v693_v45 = vpack.c.bf16 %v2014_v24, %v2012_v17  ;;  %v2038_v8 = vadd.f32 %v483_v58, %v1948_v1  ;;  %v2040_v38 = vadd.f32 %v485_v5, %v413_v4 }
 0x13f   :  { %736 = vmatprep.subr.bf16.mxu1 %v689_v60  ;;  %2463 = vst [vmem:[#allocation51_spill] sm:$0xff] %v2027_v18  ;;  %v487_v61 = vmul.f32 %v419_v6, %v1854_v42  ;;  %v489_v11 = vmul.f32 %v423_v13, %v1856_v43  ;;  %v692_v34 = vpack.c.bf16 %v2027_v18, %v2024_v25 }
 0x140   :  { %737 = vmatpush1.bf16.msra.mxu1 %v688_v2  ;;  %2464 = vst [vmem:[#allocation52_spill] sm:$0xff] %v2038_v8  ;;  %v2047_v40 = vadd.f32 %v482_v36, %v1944_v10  ;;  %v2050_v41 = vadd.f32 %v484_v37, %v1951_v48  ;;  %v486_v1 = vmul.f32 %v1966_v16, %v1862_v46 }
 0x141   :  { %738 = vmatprep.subr.bf16.mxu1 %v691_v44  ;;  %v488_v4 = vmul.f32 %v421_v32, %v1864_v47  ;;  %v2055_v59 = vadd.f32 %v487_v61, %v419_v6  ;;  %v2057_v42 = vadd.f32 %v489_v11, %v423_v13  ;;  %v695_v43 = vpack.c.bf16 %v2040_v38, %v2038_v8  ;;  %v2470_v11 = vld [vmem:[#allocation38_spill] sm:$0xff] }
 0x142   :  { %2465 = vst [vmem:[#allocation53_spill] sm:$0xff] %v2047_v40  ;;  %2466 = vst [vmem:[#allocation54_spill] sm:$0xff] %v2050_v41  ;;  %v694_v10 = vpack.c.bf16 %v2050_v41, %v2047_v40  ;;  %v2064_v48 = vadd.f32 %v486_v1, %v1966_v16  ;;  %v2469_v13 = vmov 0   ;;  %v2471_v1 = vld [vmem:[#allocation36_spill] sm:$0xff] }
 0x143   :  { %2467 = vst [vmem:[#allocation55_spill] sm:$0xff] %v2055_v59  ;;  %2468 = vst [vmem:[#allocation56_spill] sm:$0xff] %v2057_v42  ;;  %v2066_v57 = vadd.f32 %v488_v4, %v421_v32  ;;  %v697_v46 = vpack.c.bf16 %v2057_v42, %v2055_v59 }
 0x144   :  { %739 = vmatpush1.bf16.msra.mxu1 %v690_v63 }
 0x145   :  { %740 = vmatprep.subr.bf16.mxu1 %v693_v45  ;;  %v696_v6 = vpack.c.bf16 %v2066_v57, %v2064_v48 }
 0x148   :  { %741 = vmatpush1.bf16.msra.mxu1 %v692_v34 }
 0x149   :  { %742 = vmatprep.subr.bf16.mxu1 %v695_v43 }
 0x14c   :  { %743 = vmatpush1.bf16.msra.mxu1 %v694_v10  ;;  %v2472_v10 = vld [vmem:[#allocation37_spill] sm:$0xff] }
 0x14d   :  { %744 = vmatprep.subr.bf16.mxu1 %v697_v46 }
 0x150   :  { %745 = vmatpush1.bf16.msra.mxu1 %v696_v6 }
 0x153   :  { %763 = vmatmul.mubr.bf16.vlgmr.msra.gmra.mrb[16].mxu1 %v1868_v49 }
 0x154   :  { %772 = vmatprep.mubr.bf16.mxu1 %v2469_v13 }
 0x15b   :  { %773 = vmatmul.mubr.bf16.gmra.mrb[20].mxu1 %v1876_v51 }
 0x15c   :  { %782 = vmatprep.mubr.bf16.mxu1 %v2469_v13 }
 0x163   :  { %783 = vmatmul.mubr.bf16.gmra.mrb[24].mxu1 %v1884_v53 }
 0x164   :  { %792 = vmatprep.mubr.bf16.mxu1 %v2469_v13 }
 0x16b   :  { %793 = vmatmul.mubr.bf16.gmra.mrb[28].mxu1 %v1892_v55 }
 0x16c   :  { %802 = vmatprep.mubr.bf16.mxu1 %v2469_v13 }
 0x173   :  { %803 = vmatmul.mubr.bf16.gmra.mrb[32].mxu1 %v1870_v50 }
 0x174   :  { %812 = vmatprep.mubr.bf16.mxu1 %v2469_v13 }
 0x17b   :  { %813 = vmatmul.mubr.bf16.gmra.mrb[36].mxu1 %v1878_v52 }
 0x17c   :  { %822 = vmatprep.mubr.bf16.mxu1 %v2469_v13 }
 0x183   :  { %823 = vmatmul.mubr.bf16.gmra.mrb[40].mxu1 %v1886_v54 }
 0x184   :  { %832 = vmatprep.mubr.bf16.mxu1 %v2469_v13 }
 0x18b   :  { %833 = vmatmul.mubr.bf16.gmra.mrb[44].mxu1 %v1894_v56 }
 0x226   :  { %v764_v16 = vpop.f32.mrb[16].mxu1 }
 0x227   :  { %v766_v47 = vpop.f32.mrb[17].mxu1  ;;  %v875_v9 = vmul.f32 %v764_v16, %v1918_v29 }
 0x228   :  { %v876_v32 = vmul.f32 %v766_v47, %v1914_v21  ;;  %v768_v62 = vpop.f32.mrb[18].mxu1 }
 0x229   :  { %v877_v15 = vmul.f32 %v768_v62, %v1912_v20  ;;  %v770_v30 = vpop.f32.mrb[19].mxu1  ;;  %v2097_v5 = vadd.f32 %v875_v9, %v764_v16 }
 0x22a   :  { %v878_v31 = vmul.f32 %v770_v30, %v1916_v27  ;;  %v2093_v2 = vadd.f32 %v876_v32, %v766_v47 }
 0x22b   :  { %v2091_v60 = vadd.f32 %v877_v15, %v768_v62 }
 0x22c   :  { %v2095_v58 = vadd.f32 %v878_v31, %v770_v30 }
 0x22d   :  { %v1099_v36 = vpack.c.bf16 %v2091_v60, %v2097_v5 }
 0x22e   :  { %v774_v44 = vpop.f32.mrb[20].mxu1  ;;  %v1100_v63 = vpack.c.bf16 %v2095_v58, %v2093_v2 }
 0x22f   :  { %v776_v37 = vpop.f32.mrb[21].mxu1  ;;  %v879_v34 = vmul.f32 %v774_v44, %v2470_v11 }
 0x230   :  { %v880_v45 = vmul.f32 %v776_v37, %v1936_v0  ;;  %v778_v61 = vpop.f32.mrb[22].mxu1  ;;  %1147 = vmatprep.subr.bf16.mxu0 %v1100_v63 }
 0x231   :  { %v881_v4 = vmul.f32 %v778_v61, %v2471_v1  ;;  %v780_v43 = vpop.f32.mrb[23].mxu1  ;;  %1148 = vmatpush1.bf16.msra.mxu0 %v1099_v36  ;;  %v2113_v32 = vadd.f32 %v879_v34, %v774_v44  ;;  %v2474_v44 = vld [vmem:[#allocation41_spill] sm:$0xff] }
 0x232   :  { %v882_v46 = vmul.f32 %v780_v43, %v2472_v10  ;;  %v2109_v16 = vadd.f32 %v880_v45, %v776_v37  ;;  %v2473_v37 = vld [vmem:[#allocation39_spill] sm:$0xff] }
 0x233   :  { %v2107_v6 = vadd.f32 %v881_v4, %v778_v61 }
 0x234   :  { %v2111_v47 = vadd.f32 %v882_v46, %v780_v43 }
 0x235   :  { %v1101_v15 = vpack.c.bf16 %v2107_v6, %v2113_v32 }
 0x236   :  { %v784_v62 = vpop.f32.mrb[24].mxu1  ;;  %v1102_v9 = vpack.c.bf16 %v2111_v47, %v2109_v16 }
 0x237   :  { %v786_v30 = vpop.f32.mrb[25].mxu1  ;;  %v883_v36 = vmul.f32 %v784_v62, %v1962_v12 }
 0x238   :  { %v884_v31 = vmul.f32 %v786_v30, %v1958_v3  ;;  %v788_v63 = vpop.f32.mrb[26].mxu1  ;;  %1149 = vmatprep.subr.bf16.mxu0 %v1102_v9 }
 0x239   :  { %v885_v45 = vmul.f32 %v788_v63, %v2473_v37  ;;  %v790_v61 = vpop.f32.mrb[27].mxu1  ;;  %1150 = vmatpush1.bf16.msra.mxu0 %v1101_v15  ;;  %v2129_v35 = vadd.f32 %v883_v36, %v784_v62 }
 0x23a   :  { %v886_v34 = vmul.f32 %v790_v61, %v2474_v44  ;;  %v2125_v43 = vadd.f32 %v884_v31, %v786_v30 }
 0x23b   :  { %v2123_v4 = vadd.f32 %v885_v45, %v788_v63 }
 0x23c   :  { %v2127_v46 = vadd.f32 %v886_v34, %v790_v61 }
 0x23d   :  { %v1103_v3 = vpack.c.bf16 %v2123_v4, %v2129_v35 }
 0x23e   :  { %2475 = vst [vmem:[#allocation38_spill] sm:$0xff] %v2127_v46  ;;  %v794_v33 = vpop.f32.mrb[28].mxu1  ;;  %v1104_v9 = vpack.c.bf16 %v2127_v46, %v2125_v43 }
 0x23f   :  { %v796_v37 = vpop.f32.mrb[29].mxu1  ;;  %v887_v63 = vmul.f32 %v794_v33, %v1997_v19 }
 0x240   :  { %v888_v15 = vmul.f32 %v796_v37, %v1993_v22  ;;  %v798_v12 = vpop.f32.mrb[30].mxu1  ;;  %1151 = vmatprep.subr.bf16.mxu0 %v1104_v9 }
 0x241   :  { %v889_v30 = vmul.f32 %v798_v12, %v1985_v7  ;;  %v800_v31 = vpop.f32.mrb[31].mxu1  ;;  %1152 = vmatpush1.bf16.msra.mxu0 %v1103_v3  ;;  %v2145_v34 = vadd.f32 %v887_v63, %v794_v33 }
 0x242   :  { %v890_v62 = vmul.f32 %v800_v31, %v1995_v26  ;;  %v2141_v45 = vadd.f32 %v888_v15, %v796_v37 }
 0x243   :  { %v2139_v36 = vadd.f32 %v889_v30, %v798_v12 }
 0x244   :  { %v2143_v61 = vadd.f32 %v890_v62, %v800_v31 }
 0x245   :  { %v1105_v22 = vpack.c.bf16 %v2139_v36, %v2145_v34 }
 0x246   :  { %2476 = vst [vmem:[#allocation36_spill] sm:$0xff] %v2143_v61  ;;  %v804_v46 = vpop.f32.mrb[32].mxu1  ;;  %v1106_v9 = vpack.c.bf16 %v2143_v61, %v2141_v45 }
 0x247   :  { %v806_v7 = vpop.f32.mrb[33].mxu1  ;;  %v891_v12 = vmul.f32 %v804_v46, %v2000_v28 }
 0x248   :  { %v892_v3 = vmul.f32 %v806_v7, %v1988_v23  ;;  %v808_v19 = vpop.f32.mrb[34].mxu1  ;;  %1153 = vmatprep.subr.bf16.mxu0 %v1106_v9 }
 0x249   :  { %v893_v37 = vmul.f32 %v808_v19, %v2009_v14  ;;  %v810_v15 = vpop.f32.mrb[35].mxu1  ;;  %1154 = vmatpush1.bf16.msra.mxu0 %v1105_v22  ;;  %v2161_v62 = vadd.f32 %v891_v12, %v804_v46 }
 0x24a   :  { %v894_v33 = vmul.f32 %v810_v15, %v1991_v39  ;;  %v2157_v30 = vadd.f32 %v892_v3, %v806_v7 }
 0x24b   :  { %v2155_v63 = vadd.f32 %v893_v37, %v808_v19 }
 0x24c   :  { %v2159_v31 = vadd.f32 %v894_v33, %v810_v15 }
 0x24d   :  { %v1107_v23 = vpack.c.bf16 %v2155_v63, %v2161_v62 }
 0x24e   :  { %2477 = vst [vmem:[#allocation37_spill] sm:$0xff] %v2159_v31  ;;  %v814_v61 = vpop.f32.mrb[36].mxu1  ;;  %v1108_v9 = vpack.c.bf16 %v2159_v31, %v2157_v30 }
 0x24f   :  { %v816_v14 = vpop.f32.mrb[37].mxu1  ;;  %v895_v19 = vmul.f32 %v814_v61, %v2024_v25 }
 0x250   :  { %v896_v22 = vmul.f32 %v816_v14, %v2012_v17  ;;  %v818_v28 = vpop.f32.mrb[38].mxu1  ;;  %1155 = vmatprep.subr.bf16.mxu0 %v1108_v9 }
 0x251   :  { %v897_v7 = vmul.f32 %v818_v28, %v2027_v18  ;;  %v820_v3 = vpop.f32.mrb[39].mxu1  ;;  %1156 = vmatpush1.bf16.msra.mxu0 %v1107_v23  ;;  %v2177_v33 = vadd.f32 %v895_v19, %v814_v61 }
 0x252   :  { %v898_v46 = vmul.f32 %v820_v3, %v2014_v24  ;;  %v2173_v37 = vadd.f32 %v896_v22, %v816_v14 }
 0x253   :  { %v2171_v12 = vadd.f32 %v897_v7, %v818_v28 }
 0x254   :  { %v2175_v15 = vadd.f32 %v898_v46, %v820_v3 }
 0x255   :  { %v1109_v17 = vpack.c.bf16 %v2171_v12, %v2177_v33 }
 0x256   :  { %2478 = vst [vmem:[#allocation41_spill] sm:$0xff] %v2175_v15  ;;  %v824_v31 = vpop.f32.mrb[40].mxu1  ;;  %v1110_v9 = vpack.c.bf16 %v2175_v15, %v2173_v37 }
 0x257   :  { %v826_v18 = vpop.f32.mrb[41].mxu1  ;;  %v899_v28 = vmul.f32 %v824_v31, %v2047_v40 }
 0x258   :  { %v900_v23 = vmul.f32 %v826_v18, %v2038_v8  ;;  %v828_v25 = vpop.f32.mrb[42].mxu1  ;;  %1157 = vmatprep.subr.bf16.mxu0 %v1110_v9 }
 0x259   :  { %v901_v14 = vmul.f32 %v828_v25, %v2050_v41  ;;  %v830_v22 = vpop.f32.mrb[43].mxu1  ;;  %1158 = vmatpush1.bf16.msra.mxu0 %v1109_v17  ;;  %v2193_v46 = vadd.f32 %v899_v28, %v824_v31 }
 0x25a   :  { %v902_v61 = vmul.f32 %v830_v22, %v2040_v38  ;;  %v2189_v7 = vadd.f32 %v900_v23, %v826_v18 }
 0x25b   :  { %v2187_v19 = vadd.f32 %v901_v14, %v828_v25 }
 0x25c   :  { %v2191_v3 = vadd.f32 %v902_v61, %v830_v22 }
 0x25d   :  { %v1111_v8 = vpack.c.bf16 %v2187_v19, %v2193_v46 }
 0x25e   :  { %v834_v15 = vpop.f32.mrb[44].mxu1  ;;  %v1112_v9 = vpack.c.bf16 %v2191_v3, %v2189_v7 }
 0x25f   :  { %v836_v41 = vpop.f32.mrb[45].mxu1  ;;  %v903_v25 = vmul.f32 %v834_v15, %v2064_v48 }
 0x260   :  { %v904_v17 = vmul.f32 %v836_v41, %v2055_v59  ;;  %v838_v40 = vpop.f32.mrb[46].mxu1  ;;  %1159 = vmatprep.subr.bf16.mxu0 %v1112_v9 }
 0x261   :  { %v905_v18 = vmul.f32 %v838_v40, %v2066_v57  ;;  %v840_v23 = vpop.f32.mrb[47].mxu1  ;;  %1160 = vmatpush1.bf16.msra.mxu0 %v1111_v8  ;;  %v2209_v61 = vadd.f32 %v903_v25, %v834_v15  ;;  %v2483_v25 = vld [vmem:[#allocation15_spill] sm:$0xff] }
 0x262   :  { %v906_v31 = vmul.f32 %v840_v23, %v2057_v42  ;;  %v2205_v14 = vadd.f32 %v904_v17, %v836_v41  ;;  %v2484_v42 = vld [vmem:[#allocation20_spill] sm:$0xff] }
 0x263   :  { %v2203_v28 = vadd.f32 %v905_v18, %v838_v40 }
 0x264   :  { %v2207_v22 = vadd.f32 %v906_v31, %v840_v23 }
 0x265   :  { %v1113_v9 = vpack.c.bf16 %v2203_v28, %v2209_v61 }
 0x266   :  { %2479 = vst [vmem:[#allocation57_spill] sm:$0xff] %v2207_v22  ;;  %v1114_v59 = vpack.c.bf16 %v2207_v22, %v2205_v14 }
 0x268   :  { %1161 = vmatprep.subr.bf16.mxu0 %v1114_v59  ;;  %v2482_v59 = vld [vmem:[#allocation17_spill] sm:$0xff] }
 0x269   :  { %1162 = vmatpush1.bf16.msra.mxu0 %v1113_v9 }
 0x26c   :  { %1180 = vmatmul.mubr.bf16.vlgmr.msra.gmra.mrb[16].mxu0 %v1868_v49 }
 0x26d   :  { %1189 = vmatprep.mubr.bf16.mxu0 %v2469_v13 }
 0x274   :  { %1190 = vmatmul.mubr.bf16.gmra.mrb[20].mxu0 %v1876_v51  ;;  %v2480_v51 = vld [vmem:[#allocation16_spill] sm:$0xff] }
 0x275   :  { %1199 = vmatprep.mubr.bf16.mxu0 %v2469_v13 }
 0x27c   :  { %1200 = vmatmul.mubr.bf16.gmra.mrb[24].mxu0 %v1884_v53  ;;  %v586_v53 = vadd.f32 %v1918_v29, %v2480_v51  ;;  %v589_v29 = vadd.f32 %v1916_v27, %v2483_v25  ;;  %v590_v27 = vadd.f32 %v2470_v11, %v2484_v42  ;;  %v2487_v25 = vld [vmem:[#allocation19_spill] sm:$0xff] }
 0x27d   :  { %1209 = vmatprep.mubr.bf16.mxu0 %v2469_v13 }
 0x284   :  { %1210 = vmatmul.mubr.bf16.gmra.mrb[28].mxu0 %v1892_v55 }
 0x285   :  { %1219 = vmatprep.mubr.bf16.mxu0 %v2469_v13 }
 0x28c   :  { %1220 = vmatmul.mubr.bf16.gmra.mrb[32].mxu0 %v1870_v50  ;;  %v2481_v50 = vld [vmem:[#allocation14_spill] sm:$0xff] }
 0x28d   :  { %1229 = vmatprep.mubr.bf16.mxu0 %v2469_v13  ;;  %v587_v40 = vadd.f32 %v1914_v21, %v2481_v50 }
 0x28f   :  { %v1004_v18 = vadd.f32 %v2093_v2, %v587_v40 }
 0x294   :  { %1230 = vmatmul.mubr.bf16.gmra.mrb[36].mxu0 %v1878_v52 }
 0x295   :  { %1239 = vmatprep.mubr.bf16.mxu0 %v2469_v13 }
 0x29c   :  { %1240 = vmatmul.mubr.bf16.gmra.mrb[40].mxu0 %v1886_v54  ;;  %v588_v54 = vadd.f32 %v1912_v20, %v2482_v59  ;;  %v1006_v20 = vadd.f32 %v2095_v58, %v589_v29  ;;  %v593_v29 = vadd.f32 %v2472_v10, %v2487_v25  ;;  %v2488_v10 = vld [vmem:[#allocation24_spill] sm:$0xff] }
 0x29d   :  { %1249 = vmatprep.mubr.bf16.mxu0 %v2469_v13  ;;  %v1003_v13 = vadd.f32 %v2097_v5, %v586_v53 }
 0x29e   :  { %v1005_v9 = vadd.f32 %v2091_v60, %v588_v54 }
 0x2a4   :  { %1250 = vmatmul.mubr.bf16.gmra.mrb[44].mxu0 %v1894_v56 }
 0x33f   :  { %v1181_v49 = vpop.f32.mrb[16].mxu0 }
 0x340   :  { %v1292_v55 = vmul.f32 %v1181_v49, %v2097_v5  ;;  %v1183_v8 = vpop.f32.mrb[17].mxu0 }
 0x341   :  { %v1293_v52 = vmul.f32 %v1183_v8, %v2093_v2  ;;  %v1185_v41 = vpop.f32.mrb[18].mxu0 }
 0x342   :  { %v1324_v15 = vadd.f32 %v1292_v55, %v1181_v49  ;;  %v1294_v56 = vmul.f32 %v1185_v41, %v2091_v60  ;;  %v1187_v17 = vpop.f32.mrb[19].mxu0 }
 0x343   :  { %v1325_v23 = vadd.f32 %v1293_v52, %v1183_v8  ;;  %v1295_v21 = vmul.f32 %v1187_v17, %v2095_v58  ;;  %v2485_v52 = vld [vmem:[#allocation18_spill] sm:$0xff] }
 0x344   :  { %v1420_v31 = vadd.f32 %v1324_v15, %v1003_v13  ;;  %v1326_v51 = vadd.f32 %v1294_v56, %v1185_v41  ;;  %v591_v60 = vadd.f32 %v1936_v0, %v2485_v52  ;;  %v2486_v13 = vld [vmem:[#allocation21_spill] sm:$0xff]  ;;  %v1007_v56 = vadd.f32 %v2113_v32, %v590_v27 }
 0x345   :  { %v1421_v50 = vadd.f32 %v1325_v23, %v1004_v18  ;;  %v1327_v5 = vadd.f32 %v1295_v21, %v1187_v17  ;;  %v592_v15 = vadd.f32 %v2471_v1, %v2486_v13 }
 0x346   :  { %v1516_v49 = vmul.f32 0.25, %v1420_v31  ;;  %v1422_v53 = vadd.f32 %v1326_v51, %v1005_v9  ;;  %v1008_v0 = vadd.f32 %v2109_v16, %v591_v60  ;;  %v2492_v60 = vld [vmem:[#allocation25_spill] sm:$0xff] }
 0x347   :  { %v1517_v55 = vmul.f32 0.25, %v1421_v50  ;;  %v1423_v59 = vadd.f32 %v1327_v5, %v1006_v20  ;;  %v1191_v22 = vpop.f32.mrb[20].mxu0  ;;  %v1009_v31 = vadd.f32 %v2107_v6, %v592_v15 }
 0x348   :  { %1548 = vst [vmem:[#allocation10] sm:$0xff] %v1516_v49  ;;  %v1518_v2 = vmul.f32 0.25, %v1422_v53  ;;  %v1296_v8 = vmul.f32 %v1191_v22, %v2113_v32  ;;  %v1193_v40 = vpop.f32.mrb[21].mxu0  ;;  %v1010_v32 = vadd.f32 %v2111_v47, %v593_v29  ;;  %v2489_v53 = vld [vmem:[#allocation42_spill] sm:$0xff] }
 0x349   :  { %1549 = vst [vmem:[#allocation10 + $0x8] sm:$0xff] %v1517_v55  ;;  %v1519_v41 = vmul.f32 0.25, %v1423_v59  ;;  %v1297_v58 = vmul.f32 %v1193_v40, %v2109_v16  ;;  %v1195_v54 = vpop.f32.mrb[22].mxu0  ;;  %v594_v55 = vadd.f32 %v2489_v53, %v2488_v10  ;;  %v2495_v29 = vld [vmem:[#allocation38_spill] sm:$0xff] }
 0x34a   :  { %1550 = vst [vmem:[#allocation10 + $0x10] sm:$0xff] %v1518_v2  ;;  %v1328_v42 = vadd.f32 %v1296_v8, %v1191_v22  ;;  %v1298_v11 = vmul.f32 %v1195_v54, %v2107_v6  ;;  %v1197_v17 = vpop.f32.mrb[23].mxu0  ;;  %v2490_v2 = vld [vmem:[#allocation22_spill] sm:$0xff]  ;;  %v2491_v6 = vld [vmem:[#allocation40_spill] sm:$0xff] }
 0x34b   :  { %1551 = vst [vmem:[#allocation10 + $0x18] sm:$0xff] %v1519_v41  ;;  %v1329_v18 = vadd.f32 %v1297_v58, %v1193_v40  ;;  %v1299_v23 = vmul.f32 %v1197_v17, %v2111_v47  ;;  %v595_v8 = vadd.f32 %v2491_v6, %v2490_v2  ;;  %v2493_v41 = vld [vmem:[#allocation39_spill] sm:$0xff]  ;;  %v2498_v53 = vld [vmem:[#allocation26_spill] sm:$0xff]  ;;  %v2500_v2 = vld [vmem:[#allocation29_spill] sm:$0xff] }
 0x34c   :  { %v1424_v21 = vadd.f32 %v1328_v42, %v1007_v56  ;;  %v1330_v1 = vadd.f32 %v1298_v11, %v1195_v54  ;;  %v596_v58 = vadd.f32 %v2493_v41, %v2492_v60  ;;  %v1011_v54 = vadd.f32 %v2129_v35, %v594_v55  ;;  %v2494_v42 = vld [vmem:[#allocation23_spill] sm:$0xff] }
 0x34d   :  { %v1425_v9 = vadd.f32 %v1329_v18, %v1008_v0  ;;  %v1331_v22 = vadd.f32 %v1299_v23, %v1197_v17  ;;  %v597_v11 = vadd.f32 %v2474_v44, %v2494_v42  ;;  %v1012_v17 = vadd.f32 %v2125_v43, %v595_v8  ;;  %v2496_v44 = vld [vmem:[#allocation28_spill] sm:$0xff]  ;;  %v2501_v6 = vld [vmem:[#allocation43_spill] sm:$0xff] }
 0x34e   :  { %v1520_v51 = vmul.f32 0.25, %v1424_v21  ;;  %v1426_v50 = vadd.f32 %v1330_v1, %v1009_v31  ;;  %v1013_v23 = vadd.f32 %v2123_v4, %v596_v58  ;;  %v600_v8 = vadd.f32 %v2501_v6, %v2500_v2  ;;  %v2502_v41 = vld [vmem:[#allocation27_spill] sm:$0xff]  ;;  %v2511_v6 = vld [vmem:[#allocation37_spill] sm:$0xff] }
 0x34f   :  { %v1521_v20 = vmul.f32 0.25, %v1425_v9  ;;  %v1427_v5 = vadd.f32 %v1331_v22, %v1010_v32  ;;  %v1201_v49 = vpop.f32.mrb[24].mxu0  ;;  %v601_v58 = vadd.f32 %v1995_v26, %v2502_v41  ;;  %v2504_v26 = vld [vmem:[#allocation32_spill] sm:$0xff] }
 0x350   :  { %1552 = vst [vmem:[#allocation10 + $0x20] sm:$0xff] %v1520_v51  ;;  %v1522_v16 = vmul.f32 0.25, %v1426_v50  ;;  %v1300_v59 = vmul.f32 %v1201_v49, %v2129_v35  ;;  %v1203_v27 = vpop.f32.mrb[25].mxu0  ;;  %v1014_v35 = vadd.f32 %v2495_v29, %v597_v11  ;;  %v1017_v11 = vadd.f32 %v2139_v36, %v600_v8 }
 0x351   :  { %1553 = vst [vmem:[#allocation10 + $0x28] sm:$0xff] %v1521_v20  ;;  %v1523_v40 = vmul.f32 0.25, %v1427_v5  ;;  %v1301_v47 = vmul.f32 %v1203_v27, %v2125_v43  ;;  %v1205_v52 = vpop.f32.mrb[26].mxu0  ;;  %v2497_v20 = vld [vmem:[#allocation46_spill] sm:$0xff] }
 0x352   :  { %1554 = vst [vmem:[#allocation10 + $0x30] sm:$0xff] %v1522_v16  ;;  %v1332_v13 = vadd.f32 %v1300_v59, %v1201_v49  ;;  %v1302_v15 = vmul.f32 %v1205_v52, %v2123_v4  ;;  %v1207_v56 = vpop.f32.mrb[27].mxu0  ;;  %v598_v5 = vadd.f32 %v2497_v20, %v2496_v44  ;;  %v2499_v4 = vld [vmem:[#allocation45_spill] sm:$0xff] }
 0x353   :  { %1555 = vst [vmem:[#allocation10 + $0x38] sm:$0xff] %v1523_v40  ;;  %v1333_v25 = vadd.f32 %v1301_v47, %v1203_v27  ;;  %v1303_v0 = vmul.f32 %v1207_v56, %v2495_v29  ;;  %v599_v55 = vadd.f32 %v2499_v4, %v2498_v53 }
 0x354   :  { %v1428_v18 = vadd.f32 %v1332_v13, %v1011_v54  ;;  %v1334_v21 = vadd.f32 %v1302_v15, %v1205_v52  ;;  %v1015_v40 = vadd.f32 %v2145_v34, %v598_v5  ;;  %v2503_v15 = vld [vmem:[#allocation36_spill] sm:$0xff]  ;;  %v2508_v5 = vld [vmem:[#allocation33_spill] sm:$0xff] }
 0x355   :  { %v1429_v31 = vadd.f32 %v1333_v25, %v1012_v17  ;;  %v1335_v1 = vadd.f32 %v1303_v0, %v1207_v56  ;;  %v1016_v54 = vadd.f32 %v2141_v45, %v599_v55 }
 0x356   :  { %v1524_v9 = vmul.f32 0.25, %v1428_v18  ;;  %v1430_v32 = vadd.f32 %v1334_v21, %v1013_v23 }
 0x357   :  { %v1525_v22 = vmul.f32 0.25, %v1429_v31  ;;  %v1431_v51 = vadd.f32 %v1335_v1, %v1014_v35  ;;  %v1211_v50 = vpop.f32.mrb[28].mxu0  ;;  %v2505_v35 = vld [vmem:[#allocation47_spill] sm:$0xff] }
 0x358   :  { %1556 = vst [vmem:[#allocation10 + $0x40] sm:$0xff] %v1524_v9  ;;  %v1526_v43 = vmul.f32 0.25, %v1430_v32  ;;  %v1304_v49 = vmul.f32 %v1211_v50, %v2145_v34  ;;  %v1213_v10 = vpop.f32.mrb[29].mxu0  ;;  %v1018_v34 = vadd.f32 %v2503_v15, %v601_v58  ;;  %v602_v1 = vadd.f32 %v2505_v35, %v2504_v26 }
 0x359   :  { %1557 = vst [vmem:[#allocation10 + $0x48] sm:$0xff] %v1525_v22  ;;  %v1527_v16 = vmul.f32 0.25, %v1431_v51  ;;  %v1305_v59 = vmul.f32 %v1213_v10, %v2141_v45  ;;  %v1215_v27 = vpop.f32.mrb[30].mxu0  ;;  %v2506_v22 = vld [vmem:[#allocation30_spill] sm:$0xff] }
 0x35a   :  { %1558 = vst [vmem:[#allocation10 + $0x50] sm:$0xff] %v1526_v43  ;;  %v1336_v47 = vadd.f32 %v1304_v49, %v1211_v50  ;;  %v1306_v52 = vmul.f32 %v1215_v27, %v2139_v36  ;;  %v1217_v60 = vpop.f32.mrb[31].mxu0  ;;  %v2507_v36 = vld [vmem:[#allocation44_spill] sm:$0xff] }
 0x35b   :  { %1559 = vst [vmem:[#allocation10 + $0x58] sm:$0xff] %v1527_v16  ;;  %v1337_v13 = vadd.f32 %v1305_v59, %v1213_v10  ;;  %v1307_v56 = vmul.f32 %v1217_v60, %v2503_v15  ;;  %v603_v51 = vadd.f32 %v2507_v36, %v2506_v22  ;;  %v2509_v43 = vld [vmem:[#allocation48_spill] sm:$0xff]  ;;  %v1019_v10 = vadd.f32 %v2161_v62, %v602_v1  ;;  %v2510_v16 = vld [vmem:[#allocation31_spill] sm:$0xff] }
 0x35c   :  { %v1432_v42 = vadd.f32 %v1336_v47, %v1015_v40  ;;  %v1338_v17 = vadd.f32 %v1306_v52, %v1215_v27  ;;  %v604_v49 = vadd.f32 %v2509_v43, %v2508_v5  ;;  %v605_v59 = vadd.f32 %v1991_v39, %v2510_v16  ;;  %v2512_v39 = vld [vmem:[#allocation34_spill] sm:$0xff] }
 0x35d   :  { %v1433_v25 = vadd.f32 %v1337_v13, %v1016_v54  ;;  %v1339_v29 = vadd.f32 %v1307_v56, %v1217_v60  ;;  %v1020_v27 = vadd.f32 %v2157_v30, %v603_v51 }
 0x35e   :  { %v1528_v0 = vmul.f32 0.25, %v1432_v42  ;;  %v1434_v18 = vadd.f32 %v1338_v17, %v1017_v11  ;;  %v1021_v47 = vadd.f32 %v2155_v63, %v604_v49  ;;  %v2513_v42 = vld [vmem:[#allocation50_spill] sm:$0xff] }
 0x35f   :  { %v1529_v23 = vmul.f32 0.25, %v1433_v25  ;;  %v1435_v21 = vadd.f32 %v1339_v29, %v1018_v34  ;;  %v1221_v31 = vpop.f32.mrb[32].mxu0  ;;  %v606_v11 = vadd.f32 %v2513_v42, %v2512_v39  ;;  %v1638_v34 = vld [vmem:[#allocation8 + $0xa8] sm:$0xff]  ;;  %v1643_v42 = vld [vmem:[#allocation8 + $0xd8] sm:$0xff] }
 0x360   :  { %1560 = vst [vmem:[#allocation10 + $0x60] sm:$0xff] %v1528_v0  ;;  %v1530_v45 = vmul.f32 0.25, %v1434_v18  ;;  %v1308_v9 = vmul.f32 %v1221_v31, %v2161_v62  ;;  %v1223_v32 = vpop.f32.mrb[33].mxu0  ;;  %v1022_v62 = vadd.f32 %v2511_v6, %v605_v59 }
 0x361   :  { %1561 = vst [vmem:[#allocation10 + $0x68] sm:$0xff] %v1529_v23  ;;  %v1531_v50 = vmul.f32 0.25, %v1435_v21  ;;  %v1309_v44 = vmul.f32 %v1223_v32, %v2157_v30  ;;  %v1225_v20 = vpop.f32.mrb[34].mxu0  ;;  %v2515_v21 = vld [vmem:[#allocation35_spill] sm:$0xff]  ;;  %v1023_v35 = vadd.f32 %v2177_v33, %v606_v11  ;;  %v613_v11 = vadd.f32 %v1643_v42, %v2040_v38  ;;  %v1644_v38 = vld [vmem:[#allocation8 + $0xe0] sm:$0xff] }
 0x362   :  { %1562 = vst [vmem:[#allocation10 + $0x70] sm:$0xff] %v1530_v45  ;;  %v1340_v53 = vadd.f32 %v1308_v9, %v1221_v31  ;;  %v1310_v4 = vmul.f32 %v1225_v20, %v2155_v63  ;;  %v1227_v55 = vpop.f32.mrb[35].mxu0  ;;  %v2514_v63 = vld [vmem:[#allocation49_spill] sm:$0xff]  ;;  %v2516_v31 = vld [vmem:[#allocation51_spill] sm:$0xff] }
 0x363   :  { %1563 = vst [vmem:[#allocation10 + $0x78] sm:$0xff] %v1531_v50  ;;  %v1341_v2 = vadd.f32 %v1309_v44, %v1223_v32  ;;  %v1311_v8 = vmul.f32 %v1227_v55, %v2511_v6  ;;  %v607_v29 = vadd.f32 %v1638_v34, %v2514_v63  ;;  %v608_v26 = vadd.f32 %v2516_v31, %v2515_v21  ;;  %v1639_v32 = vld [vmem:[#allocation8 + $0xb8] sm:$0xff] }
 0x364   :  { %v1436_v40 = vadd.f32 %v1340_v53, %v1019_v10  ;;  %v1342_v52 = vadd.f32 %v1310_v4, %v1225_v20  ;;  %v609_v22 = vadd.f32 %v1639_v32, %v2014_v24  ;;  %v2517_v50 = vld [vmem:[#allocation41_spill] sm:$0xff]  ;;  %v1640_v24 = vld [vmem:[#allocation8 + $0xc0] sm:$0xff]  ;;  %v1645_v32 = vld [vmem:[#allocation8 + $0xe8] sm:$0xff] }
 0x365   :  { %v1437_v60 = vadd.f32 %v1341_v2, %v1020_v27  ;;  %v1343_v41 = vadd.f32 %v1311_v8, %v1227_v55  ;;  %v1024_v36 = vadd.f32 %v2173_v37, %v607_v29  ;;  %v1025_v5 = vadd.f32 %v2171_v12, %v608_v26  ;;  %v2518_v27 = vld [vmem:[#allocation53_spill] sm:$0xff] }
 0x366   :  { %v1532_v58 = vmul.f32 0.25, %v1436_v40  ;;  %v1438_v54 = vadd.f32 %v1342_v52, %v1021_v47  ;;  %v610_v2 = vadd.f32 %v1640_v24, %v2518_v27  ;;  %v1641_v40 = vld [vmem:[#allocation8 + $0xc8] sm:$0xff] }
 0x367   :  { %v1533_v13 = vmul.f32 0.25, %v1437_v60  ;;  %v1439_v15 = vadd.f32 %v1343_v41, %v1022_v62  ;;  %v1231_v56 = vpop.f32.mrb[36].mxu0  ;;  %v1642_v41 = vld [vmem:[#allocation8 + $0xd0] sm:$0xff] }
 0x368   :  { %1564 = vst [vmem:[#allocation10 + $0x80] sm:$0xff] %v1532_v58  ;;  %v1534_v30 = vmul.f32 0.25, %v1438_v54  ;;  %v1312_v17 = vmul.f32 %v1231_v56, %v2177_v33  ;;  %v1233_v25 = vpop.f32.mrb[37].mxu0  ;;  %v1026_v33 = vadd.f32 %v2517_v50, %v609_v22  ;;  %v2520_v58 = vld [vmem:[#allocation54_spill] sm:$0xff] }
 0x369   :  { %1565 = vst [vmem:[#allocation10 + $0x88] sm:$0xff] %v1533_v13  ;;  %v1535_v0 = vmul.f32 0.25, %v1439_v15  ;;  %v1313_v18 = vmul.f32 %v1233_v25, %v2173_v37  ;;  %v1235_v23 = vpop.f32.mrb[38].mxu0  ;;  %v612_v54 = vadd.f32 %v1642_v41, %v2520_v58  ;;  %v1027_v13 = vadd.f32 %v2193_v46, %v610_v2 }
 0x36a   :  { %1566 = vst [vmem:[#allocation10 + $0x90] sm:$0xff] %v1534_v30  ;;  %v1344_v1 = vadd.f32 %v1312_v17, %v1231_v56  ;;  %v1314_v45 = vmul.f32 %v1235_v23, %v2171_v12  ;;  %v1237_v9 = vpop.f32.mrb[39].mxu0  ;;  %v2519_v12 = vld [vmem:[#allocation52_spill] sm:$0xff] }
 0x36b   :  { %1567 = vst [vmem:[#allocation10 + $0x98] sm:$0xff] %v1535_v0  ;;  %v1345_v51 = vadd.f32 %v1313_v18, %v1233_v25  ;;  %v1315_v44 = vmul.f32 %v1237_v9, %v2517_v50  ;;  %v611_v47 = vadd.f32 %v1641_v40, %v2519_v12  ;;  %v1029_v63 = vadd.f32 %v2187_v19, %v612_v54  ;;  %v1646_v50 = vld [vmem:[#allocation8 + $0xf0] sm:$0xff] }
 0x36c   :  { %v1440_v20 = vadd.f32 %v1344_v1, %v1023_v35  ;;  %v1346_v43 = vadd.f32 %v1314_v45, %v1235_v23  ;;  %v614_v1 = vadd.f32 %v1644_v38, %v2064_v48 }
 0x36d   :  { %v1441_v49 = vadd.f32 %v1345_v51, %v1024_v36  ;;  %v1347_v10 = vadd.f32 %v1315_v44, %v1237_v9  ;;  %v1028_v30 = vadd.f32 %v2189_v7, %v611_v47  ;;  %v616_v44 = vadd.f32 %v1646_v50, %v2066_v57 }
 0x36e   :  { %v1536_v53 = vmul.f32 0.25, %v1440_v20  ;;  %v1442_v4 = vadd.f32 %v1346_v43, %v1025_v5  ;;  %v1031_v20 = vadd.f32 %v2209_v61, %v614_v1 }
 0x36f   :  { %v1537_v55 = vmul.f32 0.25, %v1441_v49  ;;  %v1443_v16 = vadd.f32 %v1347_v10, %v1026_v33  ;;  %v1241_v59 = vpop.f32.mrb[40].mxu0  ;;  %v1647_v49 = vld [vmem:[#allocation8 + $0xf8] sm:$0xff]  ;;  %v2522_v33 = vld [vmem:[#allocation56_spill] sm:$0xff]  ;;  %v1033_v24 = vadd.f32 %v2203_v28, %v616_v44 }
 0x370   :  { %1568 = vst [vmem:[#allocation10 + $0xa0] sm:$0xff] %v1536_v53  ;;  %v1538_v37 = vmul.f32 0.25, %v1442_v4  ;;  %v1316_v6 = vmul.f32 %v1241_v59, %v2193_v46  ;;  %v1243_v8 = vpop.f32.mrb[41].mxu0  ;;  %v1030_v46 = vadd.f32 %v2191_v3, %v613_v11  ;;  %v617_v10 = vadd.f32 %v1647_v49, %v2522_v33 }
 0x371   :  { %1569 = vst [vmem:[#allocation10 + $0xa8] sm:$0xff] %v1537_v55  ;;  %v1539_v52 = vmul.f32 0.25, %v1443_v16  ;;  %v1317_v60 = vmul.f32 %v1243_v8, %v2189_v7  ;;  %v1245_v62 = vpop.f32.mrb[42].mxu0  ;;  %v2523_v55 = vld [vmem:[#allocation57_spill] sm:$0xff] }
 0x372   :  { %1570 = vst [vmem:[#allocation10 + $0xb0] sm:$0xff] %v1538_v37  ;;  %v1348_v15 = vadd.f32 %v1316_v6, %v1241_v59  ;;  %v1318_v56 = vmul.f32 %v1245_v62, %v2187_v19  ;;  %v1247_v39 = vpop.f32.mrb[43].mxu0  ;;  %v2521_v19 = vld [vmem:[#allocation55_spill] sm:$0xff] }
 0x373   :  { %1571 = vst [vmem:[#allocation10 + $0xb8] sm:$0xff] %v1539_v52  ;;  %v1349_v17 = vadd.f32 %v1317_v60, %v1243_v8  ;;  %v1319_v25 = vmul.f32 %v1247_v39, %v2191_v3  ;;  %v615_v22 = vadd.f32 %v1645_v32, %v2521_v19 }
 0x374   :  { %v1444_v34 = vadd.f32 %v1348_v15, %v1027_v13  ;;  %v1350_v29 = vadd.f32 %v1318_v56, %v1245_v62 }
 0x375   :  { %v1445_v0 = vadd.f32 %v1349_v17, %v1028_v30  ;;  %v1351_v18 = vadd.f32 %v1319_v25, %v1247_v39  ;;  %v1032_v53 = vadd.f32 %v2205_v14, %v615_v22 }
 0x376   :  { %v1540_v23 = vmul.f32 0.25, %v1444_v34  ;;  %v1446_v21 = vadd.f32 %v1350_v29, %v1029_v63 }
 0x377   :  { %v1541_v31 = vmul.f32 0.25, %v1445_v0  ;;  %v1447_v26 = vadd.f32 %v1351_v18, %v1030_v46  ;;  %v1251_v35 = vpop.f32.mrb[44].mxu0 }
 0x378   :  { %1572 = vst [vmem:[#allocation10 + $0xc0] sm:$0xff] %v1540_v23  ;;  %v1542_v7 = vmul.f32 0.25, %v1446_v21  ;;  %v1320_v45 = vmul.f32 %v1251_v35, %v2209_v61  ;;  %v1253_v9 = vpop.f32.mrb[45].mxu0  ;;  %v1034_v61 = vadd.f32 %v2523_v55, %v617_v10 }
 0x379   :  { %1573 = vst [vmem:[#allocation10 + $0xc8] sm:$0xff] %v1541_v31  ;;  %v1543_v36 = vmul.f32 0.25, %v1447_v26  ;;  %v1321_v3 = vmul.f32 %v1253_v9, %v2205_v14  ;;  %v1255_v51 = vpop.f32.mrb[46].mxu0 }
 0x37a   :  { %1574 = vst [vmem:[#allocation10 + $0xd0] sm:$0xff] %v1542_v7  ;;  %v1352_v48 = vadd.f32 %v1320_v45, %v1251_v35  ;;  %v1322_v5 = vmul.f32 %v1255_v51, %v2203_v28  ;;  %v1257_v43 = vpop.f32.mrb[47].mxu0 }
 0x37b   :  { %1575 = vst [vmem:[#allocation10 + $0xd8] sm:$0xff] %v1543_v36  ;;  %v1353_v4 = vadd.f32 %v1321_v3, %v1253_v9  ;;  %v1323_v16 = vmul.f32 %v1257_v43, %v2523_v55 }
 0x37c   :  { %v1448_v59 = vadd.f32 %v1352_v48, %v1031_v20  ;;  %v1354_v57 = vadd.f32 %v1322_v5, %v1255_v51 }
 0x37d   :  { %v1449_v27 = vadd.f32 %v1353_v4, %v1032_v53  ;;  %v1355_v2 = vadd.f32 %v1323_v16, %v1257_v43 }
 0x37e   :  { %v1544_v37 = vmul.f32 0.25, %v1448_v59  ;;  %v1450_v6 = vadd.f32 %v1354_v57, %v1033_v24 }
 0x37f   :  { %v1545_v8 = vmul.f32 0.25, %v1449_v27  ;;  %v1451_v40 = vadd.f32 %v1355_v2, %v1034_v61 }
 0x380   :  { %1576 = vst [vmem:[#allocation10 + $0xe0] sm:$0xff] %v1544_v37  ;;  %v1546_v12 = vmul.f32 0.25, %v1450_v6 }
 0x381   :  { %1577 = vst [vmem:[#allocation10 + $0xe8] sm:$0xff] %v1545_v8  ;;  %v1547_v14 = vmul.f32 0.25, %v1451_v40 }
 0x382   :  { %1578 = vst [vmem:[#allocation10 + $0xf0] sm:$0xff] %v1546_v12 }
 0x383   :  { %1579 = vst [vmem:[#allocation10 + $0xf8] sm:$0xff] %v1547_v14 }
 0x384   :  { %1703 = shalt.err (!%p1700_p6)
}
 0x385   :  { %s1704_s12 = scalar_lea.hbm %s2365_s2, 4096 }
 0x386   :  { %p1705_p7 = scmp.ne.s32.totalorder %s2365_s2, %s1704_s12  ;;  %p1708_p8 = scmp.lt.u32.totalorder %s1704_s12, %s2365_s2 }
 0x388   :  { %p1710_p9 = pnand %p1708_p8, %p1705_p7 }
 0x38a   :  { %1713 = shalt.err (!%p1710_p9)
}
 0x38b   :  { %1591 = dma.vmem_to_hbm [thread:$0]  %s1586_s8, 4096, %s2365_s2, [#allocation7], %s1724_s0, %s1724_s0, %s1725_s5  }
 0x38c   :  { %1718 = dma.done.wait [#allocation7], 4096  }
 0x38d   :  { %1719 = vsyncadd [#allocation7], 4294963200 }
 0x38e   :  { %1595 = vsyncpa [#allocation6], 1 }
 0x38f   :  { %1596 = vsyncpa [#allocation9], 1 }
 0x390   :  { %1597 = vsyncpa [#allocation7], 1 }

// kernel: tpu_custom_call.1
= control target key start
LH: loop header
LB: loop body
LE: loop exit
PB: predicated region body
PF: predicated region fallthrough
CT: control target
= control target key end

     0   :  { %7 = vsyncpa [#allocation6], 0  ;;  %s2363_s0 = inlined_call_operand.hbm [shape: bf16[128,128], index: 0, kind: input, shape index: {}]   ;;  %s2364_s1 = inlined_call_operand.hbm [shape: f32[128,256], index: 1, kind: input, shape index: {}]   ;;  %s2365_s2 = inlined_call_operand.hbm [shape: f32[128,256], index: 2, kind: output, shape index: {}]  }
   0x1   :  { %8 = vsyncpa [#allocation9], 0 }
   0x2   :  { %9 = vsyncpa [#allocation7], 0  ;;  %s1720_s9 = smov [#allocation5]   ;;  %s1648_s13 = scalar_lea.hbm %s2363_s0, 1024 }
   0x3   :  { %s15_s10 = sshll.u32 %s1720_s9, 4  ;;  %p1649_p0 = scmp.ne.s32.totalorder %s2363_s0, %s1648_s13  ;;  %s16_s10 = int_to_ptr.vmem [resolvable:$true] %s15_s10 }
   0x4   :  { %p1652_p1 = scmp.lt.u32.totalorder %s1648_s13, %s2363_s0 }
   0x6   :  { %p1654_p2 = pnand %p1652_p1, %p1649_p0 }
   0x8   :  { %1657 = shalt.err (!%p1654_p2)
}
   0x9   :  { %s1658_s18 = scalar_lea.vmem %s16_s10, 1024  ;;  %p1663_p4 = scmp.lt.s32.totalorder %s16_s10, %s16_s10 }
   0xa   :  { %p1659_p3 = scmp.ne.s32.totalorder %s16_s10, %s1658_s18  ;;  %p1664_p5 = scmp.lt.s32.totalorder %s1658_s18, %s1658_s18 }
   0xc   :  { %p1665_p6 = por %p1664_p5, %p1663_p4 }
   0xe   :  { %p1666_p7 = pnand %p1665_p6, %p1659_p3 }
  0x10   :  { %1669 = shalt.err (!%p1666_p7)
}
  0x11   :  { %s1721_s19 = smov 64   ;;  %s1722_s20 = smov 4  }
  0x12   :  { %21 = dma.hbm_to_vmem [thread:$0]  %s2363_s0, 1024, %s16_s10, [#allocation6], %s1721_s19, %s1721_s19, %s1722_s20  }
  0x13   :  { %s1723_s23 = smov [#allocation8]   ;;  %s1670_s27 = scalar_lea.hbm %s2364_s1, 4096 }
  0x14   :  { %s27_s24 = sshll.u32 %s1723_s23, 4  ;;  %p1671_p8 = scmp.ne.s32.totalorder %s2364_s1, %s1670_s27  ;;  %s28_s24 = int_to_ptr.vmem [resolvable:$true] %s27_s24 }
  0x15   :  { %p1674_p9 = scmp.lt.u32.totalorder %s1670_s27, %s2364_s1 }
  0x17   :  { %p1676_p10 = pnand %p1674_p9, %p1671_p8 }
  0x19   :  { %1679 = shalt.err (!%p1676_p10)
}
  0x1a   :  { %s1680_s4 = scalar_lea.vmem %s28_s24, 4096  ;;  %p1685_p12 = scmp.lt.s32.totalorder %s28_s24, %s28_s24 }
  0x1b   :  { %p1681_p11 = scmp.ne.s32.totalorder %s28_s24, %s1680_s4  ;;  %p1686_p13 = scmp.lt.s32.totalorder %s1680_s4, %s1680_s4 }
  0x1d   :  { %p1687_p0 = por %p1686_p13, %p1685_p12 }
  0x1f   :  { %p1688_p1 = pnand %p1687_p0, %p1681_p11 }
  0x21   :  { %1691 = shalt.err (!%p1688_p1)
}
  0x22   :  { %s1724_s0 = smov 256   ;;  %s1725_s5 = smov 16  }
  0x23   :  { %33 = dma.hbm_to_vmem [thread:$0]  %s2364_s1, 4096, %s28_s24, [#allocation9], %s1724_s0, %s1724_s0, %s1725_s5  }
  0x24   :  { %1714 = dma.done.wait [#allocation6], 1024  }
  0x25   :  { %1715 = vsyncadd [#allocation6], 4294966272 }
  0x26   :  { %1716 = dma.done.wait [#allocation9], 4096  }
  0x27   :  { %1717 = vsyncadd [#allocation9], 4294963200  ;;  %v2366_v0 = vmov 0   ;;  %v1772_v1 = vld [vmem:[#allocation8 + $0x8] sm:$0xff]  ;;  %v1774_v2 = vld [vmem:[#allocation8 + $0x18] sm:$0xff]  ;;  %s1727_s1 = smov [#allocation10]  }
  0x28   :  { %345 = vmatprep.mubr.bf16.mxu0 %v2366_v0  ;;  %385 = vmatprep.mubr.bf16.mxu1 %v2366_v0  ;;  %2426 = vst [vmem:[#allocation14_spill] sm:$0xff] %v1772_v1  ;;  %2427 = vst [vmem:[#allocation15_spill] sm:$0xff] %v1774_v2  ;;  %v1776_v3 = vld [vmem:[#allocation8] sm:$0xff]  ;;  %v218_v4 = vpack.c.bf16 %v1774_v2, %v1772_v1  ;;  %v1780_v5 = vld [vmem:[#allocation8 + $0x10] sm:$0xff]  ;;  %s1585_s8 = sshll.u32 %s1727_s1, 4  ;;  %s1586_s8 = int_to_ptr.vmem [resolvable:$true] %s1585_s8 }
  0x29   :  { %2428 = vst [vmem:[#allocation16_spill] sm:$0xff] %v1776_v3  ;;  %2429 = vst [vmem:[#allocation17_spill] sm:$0xff] %v1780_v5  ;;  %v1782_v6 = vld [vmem:[#allocation8 + $0x28] sm:$0xff]  ;;  %v1784_v7 = vld [vmem:[#allocation8 + $0x38] sm:$0xff]  ;;  %v217_v8 = vpack.c.bf16 %v1780_v5, %v1776_v3  ;;  %s1692_s9 = scalar_lea.vmem %s1586_s8, 4096  ;;  %p1697_p3 = scmp.lt.s32.totalorder %s1586_s8, %s1586_s8 }
  0x2a   :  { %2430 = vst [vmem:[#allocation18_spill] sm:$0xff] %v1782_v6  ;;  %2431 = vst [vmem:[#allocation19_spill] sm:$0xff] %v1784_v7  ;;  %v220_v9 = vpack.c.bf16 %v1784_v7, %v1782_v6  ;;  %v1790_v10 = vld [vmem:[#allocation8 + $0x20] sm:$0xff]  ;;  %v1792_v11 = vld [vmem:[#allocation8 + $0x30] sm:$0xff]  ;;  %313 = vmatprep.subr.bf16.mxu0 %v218_v4  ;;  %1606 = vmatprep.subr.bf16.mxu1 %v218_v4  ;;  %p1693_p2 = scmp.ne.s32.totalorder %s1586_s8, %s1692_s9  ;;  %p1698_p4 = scmp.lt.s32.totalorder %s1692_s9, %s1692_s9 }
  0x2b   :  { %2432 = vst [vmem:[#allocation20_spill] sm:$0xff] %v1790_v10  ;;  %2433 = vst [vmem:[#allocation21_spill] sm:$0xff] %v1792_v11  ;;  %v1794_v12 = vld [vmem:[#allocation8 + $0x48] sm:$0xff]  ;;  %v1796_v13 = vld [vmem:[#allocation8 + $0x58] sm:$0xff]  ;;  %314 = vmatpush1.bf16.msra.mxu0 %v217_v8  ;;  %v219_v14 = vpack.c.bf16 %v1792_v11, %v1790_v10  ;;  %1614 = vmatpush1.bf16.msra.mxu1 %v217_v8 }
  0x2c   :  { %2434 = vst [vmem:[#allocation22_spill] sm:$0xff] %v1794_v12  ;;  %2435 = vst [vmem:[#allocation23_spill] sm:$0xff] %v1796_v13  ;;  %315 = vmatprep.subr.bf16.mxu0 %v220_v9  ;;  %v222_v15 = vpack.c.bf16 %v1796_v13, %v1794_v12  ;;  %v1802_v16 = vld [vmem:[#allocation8 + $0x40] sm:$0xff]  ;;  %v1804_v17 = vld [vmem:[#allocation8 + $0x50] sm:$0xff]  ;;  %1607 = vmatprep.subr.bf16.mxu1 %v220_v9  ;;  %p1699_p5 = por %p1698_p4, %p1697_p3 }
  0x2d   :  { %2436 = vst [vmem:[#allocation24_spill] sm:$0xff] %v1802_v16  ;;  %2437 = vst [vmem:[#allocation25_spill] sm:$0xff] %v1804_v17  ;;  %v1806_v18 = vld [vmem:[#allocation8 + $0x68] sm:$0xff]  ;;  %v1808_v19 = vld [vmem:[#allocation8 + $0x78] sm:$0xff]  ;;  %v221_v20 = vpack.c.bf16 %v1804_v17, %v1802_v16 }
  0x2e   :  { %2438 = vst [vmem:[#allocation26_spill] sm:$0xff] %v1806_v18  ;;  %2439 = vst [vmem:[#allocation27_spill] sm:$0xff] %v1808_v19  ;;  %v224_v21 = vpack.c.bf16 %v1808_v19, %v1806_v18  ;;  %v1814_v22 = vld [vmem:[#allocation8 + $0x60] sm:$0xff]  ;;  %v1816_v23 = vld [vmem:[#allocation8 + $0x70] sm:$0xff]  ;;  %p1700_p6 = pnand %p1699_p5, %p1693_p2 }
  0x2f   :  { %316 = vmatpush1.bf16.msra.mxu0 %v219_v14  ;;  %1615 = vmatpush1.bf16.msra.mxu1 %v219_v14  ;;  %2440 = vst [vmem:[#allocation28_spill] sm:$0xff] %v1814_v22  ;;  %2441 = vst [vmem:[#allocation29_spill] sm:$0xff] %v1816_v23  ;;  %v1818_v24 = vld [vmem:[#allocation8 + $0x88] sm:$0xff]  ;;  %v1820_v25 = vld [vmem:[#allocation8 + $0x98] sm:$0xff]  ;;  %v223_v27 = vpack.c.bf16 %v1816_v23, %v1814_v22 }
  0x30   :  { %317 = vmatprep.subr.bf16.mxu0 %v222_v15  ;;  %1608 = vmatprep.subr.bf16.mxu1 %v222_v15  ;;  %2442 = vst [vmem:[#allocation30_spill] sm:$0xff] %v1818_v24  ;;  %2443 = vst [vmem:[#allocation31_spill] sm:$0xff] %v1820_v25  ;;  %v1822_v26 = vld [vmem:[#allocation8 + $0x80] sm:$0xff]  ;;  %v1826_v28 = vld [vmem:[#allocation8 + $0x90] sm:$0xff]  ;;  %v226_v29 = vpack.c.bf16 %v1820_v25, %v1818_v24 }
  0x31   :  { %2444 = vst [vmem:[#allocation32_spill] sm:$0xff] %v1822_v26  ;;  %2445 = vst [vmem:[#allocation33_spill] sm:$0xff] %v1826_v28  ;;  %v1830_v30 = vld [vmem:[#allocation8 + $0xa8] sm:$0xff]  ;;  %v1832_v31 = vld [vmem:[#allocation8 + $0xb8] sm:$0xff]  ;;  %v225_v32 = vpack.c.bf16 %v1826_v28, %v1822_v26 }
  0x32   :  { %v1836_v33 = vld [vmem:[#allocation8 + $0xa0] sm:$0xff]  ;;  %v228_v34 = vpack.c.bf16 %v1832_v31, %v1830_v30  ;;  %v1840_v35 = vld [vmem:[#allocation8 + $0xb0] sm:$0xff]  ;;  %v1842_v36 = vld [vmem:[#allocation8 + $0xc8] sm:$0xff] }
  0x33   :  { %318 = vmatpush1.bf16.msra.mxu0 %v221_v20  ;;  %1616 = vmatpush1.bf16.msra.mxu1 %v221_v20  ;;  %2446 = vst [vmem:[#allocation34_spill] sm:$0xff] %v1836_v33  ;;  %2447 = vst [vmem:[#allocation35_spill] sm:$0xff] %v1840_v35  ;;  %v1844_v37 = vld [vmem:[#allocation8 + $0xd8] sm:$0xff]  ;;  %v227_v38 = vpack.c.bf16 %v1840_v35, %v1836_v33  ;;  %v1850_v40 = vld [vmem:[#allocation8 + $0xc0] sm:$0xff] }
  0x34   :  { %319 = vmatprep.subr.bf16.mxu0 %v224_v21  ;;  %1609 = vmatprep.subr.bf16.mxu1 %v224_v21  ;;  %v230_v39 = vpack.c.bf16 %v1844_v37, %v1842_v36  ;;  %v1852_v41 = vld [vmem:[#allocation8 + $0xd0] sm:$0xff]  ;;  %v1854_v42 = vld [vmem:[#allocation8 + $0xe8] sm:$0xff]  ;;  %v1856_v43 = vld [vmem:[#allocation8 + $0xf8] sm:$0xff] }
  0x35   :  { %v229_v44 = vpack.c.bf16 %v1852_v41, %v1850_v40  ;;  %v232_v45 = vpack.c.bf16 %v1856_v43, %v1854_v42  ;;  %v1862_v46 = vld [vmem:[#allocation8 + $0xe0] sm:$0xff]  ;;  %v1864_v47 = vld [vmem:[#allocation8 + $0xf0] sm:$0xff]  ;;  %v1876_v51 = vld [vmem:[#allocation5 + $0x8] sm:$0xff]  }
  0x36   :  { %v231_v48 = vpack.c.bf16 %v1864_v47, %v1862_v46  ;;  %v1868_v49 = vld [vmem:[#allocation5] sm:$0xff]   ;;  %v1878_v52 = vld [vmem:[#allocation5 + $0x28] sm:$0xff]   ;;  %v1884_v53 = vld [vmem:[#allocation5 + $0x10] sm:$0xff]  }
  0x37   :  { %320 = vmatpush1.bf16.msra.mxu0 %v223_v27  ;;  %1617 = vmatpush1.bf16.msra.mxu1 %v223_v27  ;;  %v1870_v50 = vld [vmem:[#allocation5 + $0x20] sm:$0xff]   ;;  %v1886_v54 = vld [vmem:[#allocation5 + $0x30] sm:$0xff]   ;;  %v1892_v55 = vld [vmem:[#allocation5 + $0x18] sm:$0xff]  }
  0x38   :  { %321 = vmatprep.subr.bf16.mxu0 %v226_v29  ;;  %1610 = vmatprep.subr.bf16.mxu1 %v226_v29  ;;  %v1894_v56 = vld [vmem:[#allocation5 + $0x38] sm:$0xff]  }
  0x3b   :  { %322 = vmatpush1.bf16.msra.mxu0 %v225_v32  ;;  %1618 = vmatpush1.bf16.msra.mxu1 %v225_v32 }
  0x3c   :  { %323 = vmatprep.subr.bf16.mxu0 %v228_v34  ;;  %1611 = vmatprep.subr.bf16.mxu1 %v228_v34 }
  0x3f   :  { %324 = vmatpush1.bf16.msra.mxu0 %v227_v38  ;;  %1619 = vmatpush1.bf16.msra.mxu1 %v227_v38 }
  0x40   :  { %325 = vmatprep.subr.bf16.mxu0 %v230_v39  ;;  %1612 = vmatprep.subr.bf16.mxu1 %v230_v39 }
  0x43   :  { %326 = vmatpush1.bf16.msra.mxu0 %v229_v44  ;;  %1620 = vmatpush1.bf16.msra.mxu1 %v229_v44 }
  0x44   :  { %327 = vmatprep.subr.bf16.mxu0 %v232_v45  ;;  %1613 = vmatprep.subr.bf16.mxu1 %v232_v45 }
  0x47   :  { %328 = vmatpush1.bf16.msra.mxu0 %v231_v48  ;;  %1621 = vmatpush1.bf16.msra.mxu1 %v231_v48 }
  0x4a   :  { %346 = vmatmul.mubr.bf16.vlgmr.msra.gmra.mrb[0].mxu0 %v1868_v49  ;;  %386 = vmatmul.mubr.bf16.vlgmr.msra.gmra.mrb[0].mxu1 %v1870_v50 }
  0x4b   :  { %355 = vmatprep.mubr.bf16.mxu0 %v2366_v0  ;;  %395 = vmatprep.mubr.bf16.mxu1 %v2366_v0 }
  0x52   :  { %356 = vmatmul.mubr.bf16.gmra.mrb[4].mxu0 %v1876_v51  ;;  %396 = vmatmul.mubr.bf16.gmra.mrb[4].mxu1 %v1878_v52 }
  0x53   :  { %365 = vmatprep.mubr.bf16.mxu0 %v2366_v0  ;;  %405 = vmatprep.mubr.bf16.mxu1 %v2366_v0 }
  0x5a   :  { %366 = vmatmul.mubr.bf16.gmra.mrb[8].mxu0 %v1884_v53  ;;  %406 = vmatmul.mubr.bf16.gmra.mrb[8].mxu1 %v1886_v54 }
  0x5b   :  { %375 = vmatprep.mubr.bf16.mxu0 %v2366_v0  ;;  %415 = vmatprep.mubr.bf16.mxu1 %v2366_v0 }
  0x62   :  { %376 = vmatmul.mubr.bf16.gmra.mrb[12].mxu0 %v1892_v55  ;;  %416 = vmatmul.mubr.bf16.gmra.mrb[12].mxu1 %v1894_v56 }
  0x63   :  { %762 = vmatprep.mubr.bf16.mxu1 %v2366_v0  ;;  %1179 = vmatprep.mubr.bf16.mxu0 %v2366_v0 }
 0x11d   :  { %v347_v57 = vpop.f32.mrb[0].mxu0  ;;  %v1900_v58 = vpop.f32.mrb[0].mxu1 }
 0x11e   :  { %v349_v59 = vpop.f32.mrb[1].mxu0  ;;  %v1902_v60 = vpop.f32.mrb[1].mxu1  ;;  %v458_v4 = vmul.f32 %v347_v57, %v1776_v3 }
 0x11f   :  { %v459_v61 = vmul.f32 %v349_v59, %v1772_v1  ;;  %v351_v62 = vpop.f32.mrb[2].mxu0  ;;  %v1905_v63 = vpop.f32.mrb[2].mxu1 }
 0x120   :  { %v460_v8 = vmul.f32 %v351_v62, %v1780_v5  ;;  %v353_v9 = vpop.f32.mrb[3].mxu0  ;;  %v1909_v14 = vpop.f32.mrb[3].mxu1  ;;  %v1918_v29 = vadd.f32 %v458_v4, %v347_v57 }
 0x121   :  { %v461_v15 = vmul.f32 %v353_v9, %v1774_v2  ;;  %v1914_v21 = vadd.f32 %v459_v61, %v349_v59 }
 0x122   :  { %v1912_v20 = vadd.f32 %v460_v8, %v351_v62 }
 0x123   :  { %v1916_v27 = vadd.f32 %v461_v15, %v353_v9 }
 0x124   :  { %v682_v39 = vpack.c.bf16 %v1912_v20, %v1918_v29 }
 0x125   :  { %v357_v32 = vpop.f32.mrb[4].mxu0  ;;  %v683_v34 = vpack.c.bf16 %v1916_v27, %v1914_v21  ;;  %v1922_v38 = vpop.f32.mrb[4].mxu1 }
 0x126   :  { %v359_v44 = vpop.f32.mrb[5].mxu0  ;;  %v1926_v45 = vpop.f32.mrb[5].mxu1  ;;  %v462_v57 = vmul.f32 %v357_v32, %v1790_v10 }
 0x127   :  { %v463_v48 = vmul.f32 %v359_v44, %v1782_v6  ;;  %v361_v59 = vpop.f32.mrb[6].mxu0  ;;  %730 = vmatprep.subr.bf16.mxu1 %v683_v34  ;;  %v1929_v61 = vpop.f32.mrb[6].mxu1 }
 0x128   :  { %v464_v62 = vmul.f32 %v361_v59, %v1792_v11  ;;  %v363_v4 = vpop.f32.mrb[7].mxu0  ;;  %731 = vmatpush1.bf16.msra.mxu1 %v682_v39  ;;  %v403_v8 = vpop.f32.mrb[7].mxu1  ;;  %v1940_v6 = vadd.f32 %v462_v57, %v357_v32 }
 0x129   :  { %v465_v9 = vmul.f32 %v363_v4, %v1784_v7  ;;  %v1936_v0 = vadd.f32 %v463_v48, %v359_v44 }
 0x12a   :  { %v1934_v15 = vadd.f32 %v464_v62, %v361_v59  ;;  %2450 = vst [vmem:[#allocation38_spill] sm:$0xff] %v1940_v6 }
 0x12b   :  { %v1938_v2 = vadd.f32 %v465_v9, %v363_v4 }
 0x12c   :  { %2448 = vst [vmem:[#allocation36_spill] sm:$0xff] %v1934_v15  ;;  %v684_v39 = vpack.c.bf16 %v1934_v15, %v1940_v6 }
 0x12d   :  { %2449 = vst [vmem:[#allocation37_spill] sm:$0xff] %v1938_v2  ;;  %v367_v34 = vpop.f32.mrb[8].mxu0  ;;  %v685_v5 = vpack.c.bf16 %v1938_v2, %v1936_v0  ;;  %v1944_v10 = vpop.f32.mrb[8].mxu1 }
 0x12e   :  { %v369_v11 = vpop.f32.mrb[9].mxu0  ;;  %v1948_v1 = vpop.f32.mrb[9].mxu1  ;;  %v466_v32 = vmul.f32 %v367_v34, %v1802_v16 }
 0x12f   :  { %v467_v59 = vmul.f32 %v369_v11, %v1794_v12  ;;  %v371_v44 = vpop.f32.mrb[10].mxu0  ;;  %732 = vmatprep.subr.bf16.mxu1 %v685_v5  ;;  %v1951_v48 = vpop.f32.mrb[10].mxu1 }
 0x130   :  { %v468_v57 = vmul.f32 %v371_v44, %v1804_v17  ;;  %v373_v62 = vpop.f32.mrb[11].mxu0  ;;  %733 = vmatpush1.bf16.msra.mxu1 %v684_v39  ;;  %v413_v4 = vpop.f32.mrb[11].mxu1  ;;  %v1962_v12 = vadd.f32 %v466_v32, %v367_v34 }
 0x131   :  { %v469_v9 = vmul.f32 %v373_v62, %v1796_v13  ;;  %v1958_v3 = vadd.f32 %v467_v59, %v369_v11  ;;  %v477_v11 = vmul.f32 %v1909_v14, %v1820_v25  ;;  %v476_v25 = vmul.f32 %v1905_v63, %v1826_v28 }
 0x132   :  { %v1956_v7 = vadd.f32 %v468_v57, %v371_v44  ;;  %2454 = vst [vmem:[#allocation42_spill] sm:$0xff] %v1962_v12  ;;  %v475_v44 = vmul.f32 %v1902_v60, %v1818_v24 }
 0x133   :  { %2452 = vst [vmem:[#allocation40_spill] sm:$0xff] %v1958_v3  ;;  %v1960_v2 = vadd.f32 %v469_v9, %v373_v62 }
 0x134   :  { %2451 = vst [vmem:[#allocation39_spill] sm:$0xff] %v1956_v7  ;;  %v686_v39 = vpack.c.bf16 %v1956_v7, %v1962_v12 }
 0x135   :  { %2453 = vst [vmem:[#allocation41_spill] sm:$0xff] %v1960_v2  ;;  %v377_v5 = vpop.f32.mrb[12].mxu0  ;;  %v687_v15 = vpack.c.bf16 %v1960_v2, %v1958_v3  ;;  %v1966_v16 = vpop.f32.mrb[12].mxu1  ;;  %v474_v2 = vmul.f32 %v1900_v58, %v1822_v26 }
 0x136   :  { %v379_v17 = vpop.f32.mrb[13].mxu0  ;;  %v419_v6 = vpop.f32.mrb[13].mxu1  ;;  %v470_v57 = vmul.f32 %v377_v5, %v1814_v22 }
 0x137   :  { %v471_v34 = vmul.f32 %v379_v17, %v1806_v18  ;;  %v381_v59 = vpop.f32.mrb[14].mxu0  ;;  %734 = vmatprep.subr.bf16.mxu1 %v687_v15  ;;  %v421_v32 = vpop.f32.mrb[14].mxu1  ;;  %v479_v18 = vmul.f32 %v1926_v45, %v1830_v30  ;;  %v481_v15 = vmul.f32 %v403_v8, %v1832_v31  ;;  %v2000_v28 = vadd.f32 %v474_v2, %v1900_v58 }
 0x138   :  { %v472_v62 = vmul.f32 %v381_v59, %v1816_v23  ;;  %v383_v9 = vpop.f32.mrb[15].mxu0  ;;  %735 = vmatpush1.bf16.msra.mxu1 %v686_v39  ;;  %v423_v13 = vpop.f32.mrb[15].mxu1  ;;  %v1988_v23 = vadd.f32 %v475_v44, %v1902_v60  ;;  %v1991_v39 = vadd.f32 %v477_v11, %v1909_v14  ;;  %v478_v30 = vmul.f32 %v1922_v38, %v1836_v33 }
 0x139   :  { %v473_v24 = vmul.f32 %v383_v9, %v1808_v19  ;;  %v1993_v22 = vadd.f32 %v471_v34, %v379_v17  ;;  %v1997_v19 = vadd.f32 %v470_v57, %v377_v5  ;;  %2459 = vst [vmem:[#allocation47_spill] sm:$0xff] %v2000_v28  ;;  %v480_v31 = vmul.f32 %v1929_v61, %v1840_v35 }
 0x13a   :  { %v1985_v7 = vadd.f32 %v472_v62, %v381_v59  ;;  %2456 = vst [vmem:[#allocation44_spill] sm:$0xff] %v1988_v23  ;;  %v2009_v14 = vadd.f32 %v476_v25, %v1905_v63  ;;  %v2012_v17 = vadd.f32 %v479_v18, %v1926_v45  ;;  %v483_v58 = vmul.f32 %v1948_v1, %v1842_v36 }
 0x13b   :  { %2457 = vst [vmem:[#allocation45_spill] sm:$0xff] %v1993_v22  ;;  %v1995_v26 = vadd.f32 %v473_v24, %v383_v9  ;;  %2458 = vst [vmem:[#allocation46_spill] sm:$0xff] %v1997_v19  ;;  %v2014_v24 = vadd.f32 %v481_v15, %v403_v8  ;;  %v485_v5 = vmul.f32 %v413_v4, %v1844_v37 }
 0x13c   :  { %2455 = vst [vmem:[#allocation43_spill] sm:$0xff] %v1985_v7  ;;  %2460 = vst [vmem:[#allocation48_spill] sm:$0xff] %v2009_v14  ;;  %v688_v2 = vpack.c.bf16 %v1985_v7, %v1997_v19  ;;  %v691_v44 = vpack.c.bf16 %v1991_v39, %v1988_v23  ;;  %v2024_v25 = vadd.f32 %v478_v30, %v1922_v38 }
 0x13d   :  { %v689_v60 = vpack.c.bf16 %v1995_v26, %v1993_v22  ;;  %2461 = vst [vmem:[#allocation49_spill] sm:$0xff] %v2012_v17  ;;  %v2027_v18 = vadd.f32 %v480_v31, %v1929_v61  ;;  %v690_v63 = vpack.c.bf16 %v2009_v14, %v2000_v28  ;;  %v482_v36 = vmul.f32 %v1944_v10, %v1850_v40 }
 0x13e   :  { %2462 = vst [vmem:[#allocation50_spill] sm:$0xff] %v2024_v25  ;;  %v484_v37 = vmul.f32 %v1951_v48, %v1852_v41  ;;  %v693_v45 = vpack.c.bf16 %v2014_v24, %v2012_v17  ;;  %v2038_v8 = vadd.f32 %v483_v58, %v1948_v1  ;;  %v2040_v38 = vadd.f32 %v485_v5, %v413_v4 }
 0x13f   :  { %736 = vmatprep.subr.bf16.mxu1 %v689_v60  ;;  %2463 = vst [vmem:[#allocation51_spill] sm:$0xff] %v2027_v18  ;;  %v487_v61 = vmul.f32 %v419_v6, %v1854_v42  ;;  %v489_v11 = vmul.f32 %v423_v13, %v1856_v43  ;;  %v692_v34 = vpack.c.bf16 %v2027_v18, %v2024_v25 }
 0x140   :  { %737 = vmatpush1.bf16.msra.mxu1 %v688_v2  ;;  %2464 = vst [vmem:[#allocation52_spill] sm:$0xff] %v2038_v8  ;;  %v2047_v40 = vadd.f32 %v482_v36, %v1944_v10  ;;  %v2050_v41 = vadd.f32 %v484_v37, %v1951_v48  ;;  %v486_v1 = vmul.f32 %v1966_v16, %v1862_v46 }
 0x141   :  { %738 = vmatprep.subr.bf16.mxu1 %v691_v44  ;;  %v488_v4 = vmul.f32 %v421_v32, %v1864_v47  ;;  %v2055_v59 = vadd.f32 %v487_v61, %v419_v6  ;;  %v2057_v42 = vadd.f32 %v489_v11, %v423_v13  ;;  %v695_v43 = vpack.c.bf16 %v2040_v38, %v2038_v8  ;;  %v2470_v11 = vld [vmem:[#allocation38_spill] sm:$0xff] }
 0x142   :  { %2465 = vst [vmem:[#allocation53_spill] sm:$0xff] %v2047_v40  ;;  %2466 = vst [vmem:[#allocation54_spill] sm:$0xff] %v2050_v41  ;;  %v694_v10 = vpack.c.bf16 %v2050_v41, %v2047_v40  ;;  %v2064_v48 = vadd.f32 %v486_v1, %v1966_v16  ;;  %v2469_v13 = vmov 0   ;;  %v2471_v1 = vld [vmem:[#allocation36_spill] sm:$0xff] }
 0x143   :  { %2467 = vst [vmem:[#allocation55_spill] sm:$0xff] %v2055_v59  ;;  %2468 = vst [vmem:[#allocation56_spill] sm:$0xff] %v2057_v42  ;;  %v2066_v57 = vadd.f32 %v488_v4, %v421_v32  ;;  %v697_v46 = vpack.c.bf16 %v2057_v42, %v2055_v59 }
 0x144   :  { %739 = vmatpush1.bf16.msra.mxu1 %v690_v63 }
 0x145   :  { %740 = vmatprep.subr.bf16.mxu1 %v693_v45  ;;  %v696_v6 = vpack.c.bf16 %v2066_v57, %v2064_v48 }
 0x148   :  { %741 = vmatpush1.bf16.msra.mxu1 %v692_v34 }
 0x149   :  { %742 = vmatprep.subr.bf16.mxu1 %v695_v43 }
 0x14c   :  { %743 = vmatpush1.bf16.msra.mxu1 %v694_v10  ;;  %v2472_v10 = vld [vmem:[#allocation37_spill] sm:$0xff] }
 0x14d   :  { %744 = vmatprep.subr.bf16.mxu1 %v697_v46 }
 0x150   :  { %745 = vmatpush1.bf16.msra.mxu1 %v696_v6 }
 0x153   :  { %763 = vmatmul.mubr.bf16.vlgmr.msra.gmra.mrb[16].mxu1 %v1868_v49 }
 0x154   :  { %772 = vmatprep.mubr.bf16.mxu1 %v2469_v13 }
 0x15b   :  { %773 = vmatmul.mubr.bf16.gmra.mrb[20].mxu1 %v1876_v51 }
 0x15c   :  { %782 = vmatprep.mubr.bf16.mxu1 %v2469_v13 }
 0x163   :  { %783 = vmatmul.mubr.bf16.gmra.mrb[24].mxu1 %v1884_v53 }
 0x164   :  { %792 = vmatprep.mubr.bf16.mxu1 %v2469_v13 }
 0x16b   :  { %793 = vmatmul.mubr.bf16.gmra.mrb[28].mxu1 %v1892_v55 }
 0x16c   :  { %802 = vmatprep.mubr.bf16.mxu1 %v2469_v13 }
 0x173   :  { %803 = vmatmul.mubr.bf16.gmra.mrb[32].mxu1 %v1870_v50 }
 0x174   :  { %812 = vmatprep.mubr.bf16.mxu1 %v2469_v13 }
 0x17b   :  { %813 = vmatmul.mubr.bf16.gmra.mrb[36].mxu1 %v1878_v52 }
 0x17c   :  { %822 = vmatprep.mubr.bf16.mxu1 %v2469_v13 }
 0x183   :  { %823 = vmatmul.mubr.bf16.gmra.mrb[40].mxu1 %v1886_v54 }
 0x184   :  { %832 = vmatprep.mubr.bf16.mxu1 %v2469_v13 }
 0x18b   :  { %833 = vmatmul.mubr.bf16.gmra.mrb[44].mxu1 %v1894_v56 }
 0x226   :  { %v764_v16 = vpop.f32.mrb[16].mxu1 }
 0x227   :  { %v766_v47 = vpop.f32.mrb[17].mxu1  ;;  %v875_v9 = vmul.f32 %v764_v16, %v1918_v29 }
 0x228   :  { %v876_v32 = vmul.f32 %v766_v47, %v1914_v21  ;;  %v768_v62 = vpop.f32.mrb[18].mxu1 }
 0x229   :  { %v877_v15 = vmul.f32 %v768_v62, %v1912_v20  ;;  %v770_v30 = vpop.f32.mrb[19].mxu1  ;;  %v2097_v5 = vadd.f32 %v875_v9, %v764_v16 }
 0x22a   :  { %v878_v31 = vmul.f32 %v770_v30, %v1916_v27  ;;  %v2093_v2 = vadd.f32 %v876_v32, %v766_v47 }
 0x22b   :  { %v2091_v60 = vadd.f32 %v877_v15, %v768_v62 }
 0x22c   :  { %v2095_v58 = vadd.f32 %v878_v31, %v770_v30 }
 0x22d   :  { %v1099_v36 = vpack.c.bf16 %v2091_v60, %v2097_v5 }
 0x22e   :  { %v774_v44 = vpop.f32.mrb[20].mxu1  ;;  %v1100_v63 = vpack.c.bf16 %v2095_v58, %v2093_v2 }
 0x22f   :  { %v776_v37 = vpop.f32.mrb[21].mxu1  ;;  %v879_v34 = vmul.f32 %v774_v44, %v2470_v11 }
 0x230   :  { %v880_v45 = vmul.f32 %v776_v37, %v1936_v0  ;;  %v778_v61 = vpop.f32.mrb[22].mxu1  ;;  %1147 = vmatprep.subr.bf16.mxu0 %v1100_v63 }
 0x231   :  { %v881_v4 = vmul.f32 %v778_v61, %v2471_v1  ;;  %v780_v43 = vpop.f32.mrb[23].mxu1  ;;  %1148 = vmatpush1.bf16.msra.mxu0 %v1099_v36  ;;  %v2113_v32 = vadd.f32 %v879_v34, %v774_v44  ;;  %v2474_v44 = vld [vmem:[#allocation41_spill] sm:$0xff] }
 0x232   :  { %v882_v46 = vmul.f32 %v780_v43, %v2472_v10  ;;  %v2109_v16 = vadd.f32 %v880_v45, %v776_v37  ;;  %v2473_v37 = vld [vmem:[#allocation39_spill] sm:$0xff] }
 0x233   :  { %v2107_v6 = vadd.f32 %v881_v4, %v778_v61 }
 0x234   :  { %v2111_v47 = vadd.f32 %v882_v46, %v780_v43 }
 0x235   :  { %v1101_v15 = vpack.c.bf16 %v2107_v6, %v2113_v32 }
 0x236   :  { %v784_v62 = vpop.f32.mrb[24].mxu1  ;;  %v1102_v9 = vpack.c.bf16 %v2111_v47, %v2109_v16 }
 0x237   :  { %v786_v30 = vpop.f32.mrb[25].mxu1  ;;  %v883_v36 = vmul.f32 %v784_v62, %v1962_v12 }
 0x238   :  { %v884_v31 = vmul.f32 %v786_v30, %v1958_v3  ;;  %v788_v63 = vpop.f32.mrb[26].mxu1  ;;  %1149 = vmatprep.subr.bf16.mxu0 %v1102_v9 }
 0x239   :  { %v885_v45 = vmul.f32 %v788_v63, %v2473_v37  ;;  %v790_v61 = vpop.f32.mrb[27].mxu1  ;;  %1150 = vmatpush1.bf16.msra.mxu0 %v1101_v15  ;;  %v2129_v35 = vadd.f32 %v883_v36, %v784_v62 }
 0x23a   :  { %v886_v34 = vmul.f32 %v790_v61, %v2474_v44  ;;  %v2125_v43 = vadd.f32 %v884_v31, %v786_v30 }
 0x23b   :  { %v2123_v4 = vadd.f32 %v885_v45, %v788_v63 }
 0x23c   :  { %v2127_v46 = vadd.f32 %v886_v34, %v790_v61 }
 0x23d   :  { %v1103_v3 = vpack.c.bf16 %v2123_v4, %v2129_v35 }
 0x23e   :  { %2475 = vst [vmem:[#allocation38_spill] sm:$0xff] %v2127_v46  ;;  %v794_v33 = vpop.f32.mrb[28].mxu1  ;;  %v1104_v9 = vpack.c.bf16 %v2127_v46, %v2125_v43 }
 0x23f   :  { %v796_v37 = vpop.f32.mrb[29].mxu1  ;;  %v887_v63 = vmul.f32 %v794_v33, %v1997_v19 }
 0x240   :  { %v888_v15 = vmul.f32 %v796_v37, %v1993_v22  ;;  %v798_v12 = vpop.f32.mrb[30].mxu1  ;;  %1151 = vmatprep.subr.bf16.mxu0 %v1104_v9 }
 0x241   :  { %v889_v30 = vmul.f32 %v798_v12, %v1985_v7  ;;  %v800_v31 = vpop.f32.mrb[31].mxu1  ;;  %1152 = vmatpush1.bf16.msra.mxu0 %v1103_v3  ;;  %v2145_v34 = vadd.f32 %v887_v63, %v794_v33 }
 0x242   :  { %v890_v62 = vmul.f32 %v800_v31, %v1995_v26  ;;  %v2141_v45 = vadd.f32 %v888_v15, %v796_v37 }
 0x243   :  { %v2139_v36 = vadd.f32 %v889_v30, %v798_v12 }
 0x244   :  { %v2143_v61 = vadd.f32 %v890_v62, %v800_v31 }
 0x245   :  { %v1105_v22 = vpack.c.bf16 %v2139_v36, %v2145_v34 }
 0x246   :  { %2476 = vst [vmem:[#allocation36_spill] sm:$0xff] %v2143_v61  ;;  %v804_v46 = vpop.f32.mrb[32].mxu1  ;;  %v1106_v9 = vpack.c.bf16 %v2143_v61, %v2141_v45 }
 0x247   :  { %v806_v7 = vpop.f32.mrb[33].mxu1  ;;  %v891_v12 = vmul.f32 %v804_v46, %v2000_v28 }
 0x248   :  { %v892_v3 = vmul.f32 %v806_v7, %v1988_v23  ;;  %v808_v19 = vpop.f32.mrb[34].mxu1  ;;  %1153 = vmatprep.subr.bf16.mxu0 %v1106_v9 }
 0x249   :  { %v893_v37 = vmul.f32 %v808_v19, %v2009_v14  ;;  %v810_v15 = vpop.f32.mrb[35].mxu1  ;;  %1154 = vmatpush1.bf16.msra.mxu0 %v1105_v22  ;;  %v2161_v62 = vadd.f32 %v891_v12, %v804_v46 }
 0x24a   :  { %v894_v33 = vmul.f32 %v810_v15, %v1991_v39  ;;  %v2157_v30 = vadd.f32 %v892_v3, %v806_v7 }
 0x24b   :  { %v2155_v63 = vadd.f32 %v893_v37, %v808_v19 }
 0x24c   :  { %v2159_v31 = vadd.f32 %v894_v33, %v810_v15 }
 0x24d   :  { %v1107_v23 = vpack.c.bf16 %v2155_v63, %v2161_v62 }
 0x24e   :  { %2477 = vst [vmem:[#allocation37_spill] sm:$0xff] %v2159_v31  ;;  %v814_v61 = vpop.f32.mrb[36].mxu1  ;;  %v1108_v9 = vpack.c.bf16 %v2159_v31, %v2157_v30 }
 0x24f   :  { %v816_v14 = vpop.f32.mrb[37].mxu1  ;;  %v895_v19 = vmul.f32 %v814_v61, %v2024_v25 }
 0x250   :  { %v896_v22 = vmul.f32 %v816_v14, %v2012_v17  ;;  %v818_v28 = vpop.f32.mrb[38].mxu1  ;;  %1155 = vmatprep.subr.bf16.mxu0 %v1108_v9 }
 0x251   :  { %v897_v7 = vmul.f32 %v818_v28, %v2027_v18  ;;  %v820_v3 = vpop.f32.mrb[39].mxu1  ;;  %1156 = vmatpush1.bf16.msra.mxu0 %v1107_v23  ;;  %v2177_v33 = vadd.f32 %v895_v19, %v814_v61 }
 0x252   :  { %v898_v46 = vmul.f32 %v820_v3, %v2014_v24  ;;  %v2173_v37 = vadd.f32 %v896_v22, %v816_v14 }
 0x253   :  { %v2171_v12 = vadd.f32 %v897_v7, %v818_v28 }
 0x254   :  { %v2175_v15 = vadd.f32 %v898_v46, %v820_v3 }
 0x255   :  { %v1109_v17 = vpack.c.bf16 %v2171_v12, %v2177_v33 }
 0x256   :  { %2478 = vst [vmem:[#allocation41_spill] sm:$0xff] %v2175_v15  ;;  %v824_v31 = vpop.f32.mrb[40].mxu1  ;;  %v1110_v9 = vpack.c.bf16 %v2175_v15, %v2173_v37 }
 0x257   :  { %v826_v18 = vpop.f32.mrb[41].mxu1  ;;  %v899_v28 = vmul.f32 %v824_v31, %v2047_v40 }
 0x258   :  { %v900_v23 = vmul.f32 %v826_v18, %v2038_v8  ;;  %v828_v25 = vpop.f32.mrb[42].mxu1  ;;  %1157 = vmatprep.subr.bf16.mxu0 %v1110_v9 }
 0x259   :  { %v901_v14 = vmul.f32 %v828_v25, %v2050_v41  ;;  %v830_v22 = vpop.f32.mrb[43].mxu1  ;;  %1158 = vmatpush1.bf16.msra.mxu0 %v1109_v17  ;;  %v2193_v46 = vadd.f32 %v899_v28, %v824_v31 }
 0x25a   :  { %v902_v61 = vmul.f32 %v830_v22, %v2040_v38  ;;  %v2189_v7 = vadd.f32 %v900_v23, %v826_v18 }
 0x25b   :  { %v2187_v19 = vadd.f32 %v901_v14, %v828_v25 }
 0x25c   :  { %v2191_v3 = vadd.f32 %v902_v61, %v830_v22 }
 0x25d   :  { %v1111_v8 = vpack.c.bf16 %v2187_v19, %v2193_v46 }
 0x25e   :  { %v834_v15 = vpop.f32.mrb[44].mxu1  ;;  %v1112_v9 = vpack.c.bf16 %v2191_v3, %v2189_v7 }
 0x25f   :  { %v836_v41 = vpop.f32.mrb[45].mxu1  ;;  %v903_v25 = vmul.f32 %v834_v15, %v2064_v48 }
 0x260   :  { %v904_v17 = vmul.f32 %v836_v41, %v2055_v59  ;;  %v838_v40 = vpop.f32.mrb[46].mxu1  ;;  %1159 = vmatprep.subr.bf16.mxu0 %v1112_v9 }
 0x261   :  { %v905_v18 = vmul.f32 %v838_v40, %v2066_v57  ;;  %v840_v23 = vpop.f32.mrb[47].mxu1  ;;  %1160 = vmatpush1.bf16.msra.mxu0 %v1111_v8  ;;  %v2209_v61 = vadd.f32 %v903_v25, %v834_v15  ;;  %v2483_v25 = vld [vmem:[#allocation15_spill] sm:$0xff] }
 0x262   :  { %v906_v31 = vmul.f32 %v840_v23, %v2057_v42  ;;  %v2205_v14 = vadd.f32 %v904_v17, %v836_v41  ;;  %v2484_v42 = vld [vmem:[#allocation20_spill] sm:$0xff] }
 0x263   :  { %v2203_v28 = vadd.f32 %v905_v18, %v838_v40 }
 0x264   :  { %v2207_v22 = vadd.f32 %v906_v31, %v840_v23 }
 0x265   :  { %v1113_v9 = vpack.c.bf16 %v2203_v28, %v2209_v61 }
 0x266   :  { %2479 = vst [vmem:[#allocation57_spill] sm:$0xff] %v2207_v22  ;;  %v1114_v59 = vpack.c.bf16 %v2207_v22, %v2205_v14 }
 0x268   :  { %1161 = vmatprep.subr.bf16.mxu0 %v1114_v59  ;;  %v2482_v59 = vld [vmem:[#allocation17_spill] sm:$0xff] }
 0x269   :  { %1162 = vmatpush1.bf16.msra.mxu0 %v1113_v9 }
 0x26c   :  { %1180 = vmatmul.mubr.bf16.vlgmr.msra.gmra.mrb[16].mxu0 %v1868_v49 }
 0x26d   :  { %1189 = vmatprep.mubr.bf16.mxu0 %v2469_v13 }
 0x274   :  { %1190 = vmatmul.mubr.bf16.gmra.mrb[20].mxu0 %v1876_v51  ;;  %v2480_v51 = vld [vmem:[#allocation16_spill] sm:$0xff] }
 0x275   :  { %1199 = vmatprep.mubr.bf16.mxu0 %v2469_v13 }
 0x27c   :  { %1200 = vmatmul.mubr.bf16.gmra.mrb[24].mxu0 %v1884_v53  ;;  %v586_v53 = vadd.f32 %v1918_v29, %v2480_v51  ;;  %v589_v29 = vadd.f32 %v1916_v27, %v2483_v25  ;;  %v590_v27 = vadd.f32 %v2470_v11, %v2484_v42  ;;  %v2487_v25 = vld [vmem:[#allocation19_spill] sm:$0xff] }
 0x27d   :  { %1209 = vmatprep.mubr.bf16.mxu0 %v2469_v13 }
 0x284   :  { %1210 = vmatmul.mubr.bf16.gmra.mrb[28].mxu0 %v1892_v55 }
 0x285   :  { %1219 = vmatprep.mubr.bf16.mxu0 %v2469_v13 }
 0x28c   :  { %1220 = vmatmul.mubr.bf16.gmra.mrb[32].mxu0 %v1870_v50  ;;  %v2481_v50 = vld [vmem:[#allocation14_spill] sm:$0xff] }
 0x28d   :  { %1229 = vmatprep.mubr.bf16.mxu0 %v2469_v13  ;;  %v587_v40 = vadd.f32 %v1914_v21, %v2481_v50 }
 0x28f   :  { %v1004_v18 = vadd.f32 %v2093_v2, %v587_v40 }
 0x294   :  { %1230 = vmatmul.mubr.bf16.gmra.mrb[36].mxu0 %v1878_v52 }
 0x295   :  { %1239 = vmatprep.mubr.bf16.mxu0 %v2469_v13 }
 0x29c   :  { %1240 = vmatmul.mubr.bf16.gmra.mrb[40].mxu0 %v1886_v54  ;;  %v588_v54 = vadd.f32 %v1912_v20, %v2482_v59  ;;  %v1006_v20 = vadd.f32 %v2095_v58, %v589_v29  ;;  %v593_v29 = vadd.f32 %v2472_v10, %v2487_v25  ;;  %v2488_v10 = vld [vmem:[#allocation24_spill] sm:$0xff] }
 0x29d   :  { %1249 = vmatprep.mubr.bf16.mxu0 %v2469_v13  ;;  %v1003_v13 = vadd.f32 %v2097_v5, %v586_v53 }
 0x29e   :  { %v1005_v9 = vadd.f32 %v2091_v60, %v588_v54 }
 0x2a4   :  { %1250 = vmatmul.mubr.bf16.gmra.mrb[44].mxu0 %v1894_v56 }
 0x33f   :  { %v1181_v49 = vpop.f32.mrb[16].mxu0 }
 0x340   :  { %v1292_v55 = vmul.f32 %v1181_v49, %v2097_v5  ;;  %v1183_v8 = vpop.f32.mrb[17].mxu0 }
 0x341   :  { %v1293_v52 = vmul.f32 %v1183_v8, %v2093_v2  ;;  %v1185_v41 = vpop.f32.mrb[18].mxu0 }
 0x342   :  { %v1324_v15 = vadd.f32 %v1292_v55, %v1181_v49  ;;  %v1294_v56 = vmul.f32 %v1185_v41, %v2091_v60  ;;  %v1187_v17 = vpop.f32.mrb[19].mxu0 }
 0x343   :  { %v1325_v23 = vadd.f32 %v1293_v52, %v1183_v8  ;;  %v1295_v21 = vmul.f32 %v1187_v17, %v2095_v58  ;;  %v2485_v52 = vld [vmem:[#allocation18_spill] sm:$0xff] }
 0x344   :  { %v1420_v31 = vadd.f32 %v1324_v15, %v1003_v13  ;;  %v1326_v51 = vadd.f32 %v1294_v56, %v1185_v41  ;;  %v591_v60 = vadd.f32 %v1936_v0, %v2485_v52  ;;  %v2486_v13 = vld [vmem:[#allocation21_spill] sm:$0xff]  ;;  %v1007_v56 = vadd.f32 %v2113_v32, %v590_v27 }
 0x345   :  { %v1421_v50 = vadd.f32 %v1325_v23, %v1004_v18  ;;  %v1327_v5 = vadd.f32 %v1295_v21, %v1187_v17  ;;  %v592_v15 = vadd.f32 %v2471_v1, %v2486_v13 }
 0x346   :  { %v1516_v49 = vmul.f32 0.25, %v1420_v31  ;;  %v1422_v53 = vadd.f32 %v1326_v51, %v1005_v9  ;;  %v1008_v0 = vadd.f32 %v2109_v16, %v591_v60  ;;  %v2492_v60 = vld [vmem:[#allocation25_spill] sm:$0xff] }
 0x347   :  { %v1517_v55 = vmul.f32 0.25, %v1421_v50  ;;  %v1423_v59 = vadd.f32 %v1327_v5, %v1006_v20  ;;  %v1191_v22 = vpop.f32.mrb[20].mxu0  ;;  %v1009_v31 = vadd.f32 %v2107_v6, %v592_v15 }
 0x348   :  { %1548 = vst [vmem:[#allocation10] sm:$0xff] %v1516_v49  ;;  %v1518_v2 = vmul.f32 0.25, %v1422_v53  ;;  %v1296_v8 = vmul.f32 %v1191_v22, %v2113_v32  ;;  %v1193_v40 = vpop.f32.mrb[21].mxu0  ;;  %v1010_v32 = vadd.f32 %v2111_v47, %v593_v29  ;;  %v2489_v53 = vld [vmem:[#allocation42_spill] sm:$0xff] }
 0x349   :  { %1549 = vst [vmem:[#allocation10 + $0x8] sm:$0xff] %v1517_v55  ;;  %v1519_v41 = vmul.f32 0.25, %v1423_v59  ;;  %v1297_v58 = vmul.f32 %v1193_v40, %v2109_v16  ;;  %v1195_v54 = vpop.f32.mrb[22].mxu0  ;;  %v594_v55 = vadd.f32 %v2489_v53, %v2488_v10  ;;  %v2495_v29 = vld [vmem:[#allocation38_spill] sm:$0xff] }
 0x34a   :  { %1550 = vst [vmem:[#allocation10 + $0x10] sm:$0xff] %v1518_v2  ;;  %v1328_v42 = vadd.f32 %v1296_v8, %v1191_v22  ;;  %v1298_v11 = vmul.f32 %v1195_v54, %v2107_v6  ;;  %v1197_v17 = vpop.f32.mrb[23].mxu0  ;;  %v2490_v2 = vld [vmem:[#allocation22_spill] sm:$0xff]  ;;  %v2491_v6 = vld [vmem:[#allocation40_spill] sm:$0xff] }
 0x34b   :  { %1551 = vst [vmem:[#allocation10 + $0x18] sm:$0xff] %v1519_v41  ;;  %v1329_v18 = vadd.f32 %v1297_v58, %v1193_v40  ;;  %v1299_v23 = vmul.f32 %v1197_v17, %v2111_v47  ;;  %v595_v8 = vadd.f32 %v2491_v6, %v2490_v2  ;;  %v2493_v41 = vld [vmem:[#allocation39_spill] sm:$0xff]  ;;  %v2498_v53 = vld [vmem:[#allocation26_spill] sm:$0xff]  ;;  %v2500_v2 = vld [vmem:[#allocation29_spill] sm:$0xff] }
 0x34c   :  { %v1424_v21 = vadd.f32 %v1328_v42, %v1007_v56  ;;  %v1330_v1 = vadd.f32 %v1298_v11, %v1195_v54  ;;  %v596_v58 = vadd.f32 %v2493_v41, %v2492_v60  ;;  %v1011_v54 = vadd.f32 %v2129_v35, %v594_v55  ;;  %v2494_v42 = vld [vmem:[#allocation23_spill] sm:$0xff] }
 0x34d   :  { %v1425_v9 = vadd.f32 %v1329_v18, %v1008_v0  ;;  %v1331_v22 = vadd.f32 %v1299_v23, %v1197_v17  ;;  %v597_v11 = vadd.f32 %v2474_v44, %v2494_v42  ;;  %v1012_v17 = vadd.f32 %v2125_v43, %v595_v8  ;;  %v2496_v44 = vld [vmem:[#allocation28_spill] sm:$0xff]  ;;  %v2501_v6 = vld [vmem:[#allocation43_spill] sm:$0xff] }
 0x34e   :  { %v1520_v51 = vmul.f32 0.25, %v1424_v21  ;;  %v1426_v50 = vadd.f32 %v1330_v1, %v1009_v31  ;;  %v1013_v23 = vadd.f32 %v2123_v4, %v596_v58  ;;  %v600_v8 = vadd.f32 %v2501_v6, %v2500_v2  ;;  %v2502_v41 = vld [vmem:[#allocation27_spill] sm:$0xff]  ;;  %v2511_v6 = vld [vmem:[#allocation37_spill] sm:$0xff] }
 0x34f   :  { %v1521_v20 = vmul.f32 0.25, %v1425_v9  ;;  %v1427_v5 = vadd.f32 %v1331_v22, %v1010_v32  ;;  %v1201_v49 = vpop.f32.mrb[24].mxu0  ;;  %v601_v58 = vadd.f32 %v1995_v26, %v2502_v41  ;;  %v2504_v26 = vld [vmem:[#allocation32_spill] sm:$0xff] }
 0x350   :  { %1552 = vst [vmem:[#allocation10 + $0x20] sm:$0xff] %v1520_v51  ;;  %v1522_v16 = vmul.f32 0.25, %v1426_v50  ;;  %v1300_v59 = vmul.f32 %v1201_v49, %v2129_v35  ;;  %v1203_v27 = vpop.f32.mrb[25].mxu0  ;;  %v1014_v35 = vadd.f32 %v2495_v29, %v597_v11  ;;  %v1017_v11 = vadd.f32 %v2139_v36, %v600_v8 }
 0x351   :  { %1553 = vst [vmem:[#allocation10 + $0x28] sm:$0xff] %v1521_v20  ;;  %v1523_v40 = vmul.f32 0.25, %v1427_v5  ;;  %v1301_v47 = vmul.f32 %v1203_v27, %v2125_v43  ;;  %v1205_v52 = vpop.f32.mrb[26].mxu0  ;;  %v2497_v20 = vld [vmem:[#allocation46_spill] sm:$0xff] }
 0x352   :  { %1554 = vst [vmem:[#allocation10 + $0x30] sm:$0xff] %v1522_v16  ;;  %v1332_v13 = vadd.f32 %v1300_v59, %v1201_v49  ;;  %v1302_v15 = vmul.f32 %v1205_v52, %v2123_v4  ;;  %v1207_v56 = vpop.f32.mrb[27].mxu0  ;;  %v598_v5 = vadd.f32 %v2497_v20, %v2496_v44  ;;  %v2499_v4 = vld [vmem:[#allocation45_spill] sm:$0xff] }
 0x353   :  { %1555 = vst [vmem:[#allocation10 + $0x38] sm:$0xff] %v1523_v40  ;;  %v1333_v25 = vadd.f32 %v1301_v47, %v1203_v27  ;;  %v1303_v0 = vmul.f32 %v1207_v56, %v2495_v29  ;;  %v599_v55 = vadd.f32 %v2499_v4, %v2498_v53 }
 0x354   :  { %v1428_v18 = vadd.f32 %v1332_v13, %v1011_v54  ;;  %v1334_v21 = vadd.f32 %v1302_v15, %v1205_v52  ;;  %v1015_v40 = vadd.f32 %v2145_v34, %v598_v5  ;;  %v2503_v15 = vld [vmem:[#allocation36_spill] sm:$0xff]  ;;  %v2508_v5 = vld [vmem:[#allocation33_spill] sm:$0xff] }
 0x355   :  { %v1429_v31 = vadd.f32 %v1333_v25, %v1012_v17  ;;  %v1335_v1 = vadd.f32 %v1303_v0, %v1207_v56  ;;  %v1016_v54 = vadd.f32 %v2141_v45, %v599_v55 }
 0x356   :  { %v1524_v9 = vmul.f32 0.25, %v1428_v18  ;;  %v1430_v32 = vadd.f32 %v1334_v21, %v1013_v23 }
 0x357   :  { %v1525_v22 = vmul.f32 0.25, %v1429_v31  ;;  %v1431_v51 = vadd.f32 %v1335_v1, %v1014_v35  ;;  %v1211_v50 = vpop.f32.mrb[28].mxu0  ;;  %v2505_v35 = vld [vmem:[#allocation47_spill] sm:$0xff] }
 0x358   :  { %1556 = vst [vmem:[#allocation10 + $0x40] sm:$0xff] %v1524_v9  ;;  %v1526_v43 = vmul.f32 0.25, %v1430_v32  ;;  %v1304_v49 = vmul.f32 %v1211_v50, %v2145_v34  ;;  %v1213_v10 = vpop.f32.mrb[29].mxu0  ;;  %v1018_v34 = vadd.f32 %v2503_v15, %v601_v58  ;;  %v602_v1 = vadd.f32 %v2505_v35, %v2504_v26 }
 0x359   :  { %1557 = vst [vmem:[#allocation10 + $0x48] sm:$0xff] %v1525_v22  ;;  %v1527_v16 = vmul.f32 0.25, %v1431_v51  ;;  %v1305_v59 = vmul.f32 %v1213_v10, %v2141_v45  ;;  %v1215_v27 = vpop.f32.mrb[30].mxu0  ;;  %v2506_v22 = vld [vmem:[#allocation30_spill] sm:$0xff] }
 0x35a   :  { %1558 = vst [vmem:[#allocation10 + $0x50] sm:$0xff] %v1526_v43  ;;  %v1336_v47 = vadd.f32 %v1304_v49, %v1211_v50  ;;  %v1306_v52 = vmul.f32 %v1215_v27, %v2139_v36  ;;  %v1217_v60 = vpop.f32.mrb[31].mxu0  ;;  %v2507_v36 = vld [vmem:[#allocation44_spill] sm:$0xff] }
 0x35b   :  { %1559 = vst [vmem:[#allocation10 + $0x58] sm:$0xff] %v1527_v16  ;;  %v1337_v13 = vadd.f32 %v1305_v59, %v1213_v10  ;;  %v1307_v56 = vmul.f32 %v1217_v60, %v2503_v15  ;;  %v603_v51 = vadd.f32 %v2507_v36, %v2506_v22  ;;  %v2509_v43 = vld [vmem:[#allocation48_spill] sm:$0xff]  ;;  %v1019_v10 = vadd.f32 %v2161_v62, %v602_v1  ;;  %v2510_v16 = vld [vmem:[#allocation31_spill] sm:$0xff] }
 0x35c   :  { %v1432_v42 = vadd.f32 %v1336_v47, %v1015_v40  ;;  %v1338_v17 = vadd.f32 %v1306_v52, %v1215_v27  ;;  %v604_v49 = vadd.f32 %v2509_v43, %v2508_v5  ;;  %v605_v59 = vadd.f32 %v1991_v39, %v2510_v16  ;;  %v2512_v39 = vld [vmem:[#allocation34_spill] sm:$0xff] }
 0x35d   :  { %v1433_v25 = vadd.f32 %v1337_v13, %v1016_v54  ;;  %v1339_v29 = vadd.f32 %v1307_v56, %v1217_v60  ;;  %v1020_v27 = vadd.f32 %v2157_v30, %v603_v51 }
 0x35e   :  { %v1528_v0 = vmul.f32 0.25, %v1432_v42  ;;  %v1434_v18 = vadd.f32 %v1338_v17, %v1017_v11  ;;  %v1021_v47 = vadd.f32 %v2155_v63, %v604_v49  ;;  %v2513_v42 = vld [vmem:[#allocation50_spill] sm:$0xff] }
 0x35f   :  { %v1529_v23 = vmul.f32 0.25, %v1433_v25  ;;  %v1435_v21 = vadd.f32 %v1339_v29, %v1018_v34  ;;  %v1221_v31 = vpop.f32.mrb[32].mxu0  ;;  %v606_v11 = vadd.f32 %v2513_v42, %v2512_v39  ;;  %v1638_v34 = vld [vmem:[#allocation8 + $0xa8] sm:$0xff]  ;;  %v1643_v42 = vld [vmem:[#allocation8 + $0xd8] sm:$0xff] }
 0x360   :  { %1560 = vst [vmem:[#allocation10 + $0x60] sm:$0xff] %v1528_v0  ;;  %v1530_v45 = vmul.f32 0.25, %v1434_v18  ;;  %v1308_v9 = vmul.f32 %v1221_v31, %v2161_v62  ;;  %v1223_v32 = vpop.f32.mrb[33].mxu0  ;;  %v1022_v62 = vadd.f32 %v2511_v6, %v605_v59 }
 0x361   :  { %1561 = vst [vmem:[#allocation10 + $0x68] sm:$0xff] %v1529_v23  ;;  %v1531_v50 = vmul.f32 0.25, %v1435_v21  ;;  %v1309_v44 = vmul.f32 %v1223_v32, %v2157_v30  ;;  %v1225_v20 = vpop.f32.mrb[34].mxu0  ;;  %v2515_v21 = vld [vmem:[#allocation35_spill] sm:$0xff]  ;;  %v1023_v35 = vadd.f32 %v2177_v33, %v606_v11  ;;  %v613_v11 = vadd.f32 %v1643_v42, %v2040_v38  ;;  %v1644_v38 = vld [vmem:[#allocation8 + $0xe0] sm:$0xff] }
 0x362   :  { %1562 = vst [vmem:[#allocation10 + $0x70] sm:$0xff] %v1530_v45  ;;  %v1340_v53 = vadd.f32 %v1308_v9, %v1221_v31  ;;  %v1310_v4 = vmul.f32 %v1225_v20, %v2155_v63  ;;  %v1227_v55 = vpop.f32.mrb[35].mxu0  ;;  %v2514_v63 = vld [vmem:[#allocation49_spill] sm:$0xff]  ;;  %v2516_v31 = vld [vmem:[#allocation51_spill] sm:$0xff] }
 0x363   :  { %1563 = vst [vmem:[#allocation10 + $0x78] sm:$0xff] %v1531_v50  ;;  %v1341_v2 = vadd.f32 %v1309_v44, %v1223_v32  ;;  %v1311_v8 = vmul.f32 %v1227_v55, %v2511_v6  ;;  %v607_v29 = vadd.f32 %v1638_v34, %v2514_v63  ;;  %v608_v26 = vadd.f32 %v2516_v31, %v2515_v21  ;;  %v1639_v32 = vld [vmem:[#allocation8 + $0xb8] sm:$0xff] }
 0x364   :  { %v1436_v40 = vadd.f32 %v1340_v53, %v1019_v10  ;;  %v1342_v52 = vadd.f32 %v1310_v4, %v1225_v20  ;;  %v609_v22 = vadd.f32 %v1639_v32, %v2014_v24  ;;  %v2517_v50 = vld [vmem:[#allocation41_spill] sm:$0xff]  ;;  %v1640_v24 = vld [vmem:[#allocation8 + $0xc0] sm:$0xff]  ;;  %v1645_v32 = vld [vmem:[#allocation8 + $0xe8] sm:$0xff] }
 0x365   :  { %v1437_v60 = vadd.f32 %v1341_v2, %v1020_v27  ;;  %v1343_v41 = vadd.f32 %v1311_v8, %v1227_v55  ;;  %v1024_v36 = vadd.f32 %v2173_v37, %v607_v29  ;;  %v1025_v5 = vadd.f32 %v2171_v12, %v608_v26  ;;  %v2518_v27 = vld [vmem:[#allocation53_spill] sm:$0xff] }
 0x366   :  { %v1532_v58 = vmul.f32 0.25, %v1436_v40  ;;  %v1438_v54 = vadd.f32 %v1342_v52, %v1021_v47  ;;  %v610_v2 = vadd.f32 %v1640_v24, %v2518_v27  ;;  %v1641_v40 = vld [vmem:[#allocation8 + $0xc8] sm:$0xff] }
 0x367   :  { %v1533_v13 = vmul.f32 0.25, %v1437_v60  ;;  %v1439_v15 = vadd.f32 %v1343_v41, %v1022_v62  ;;  %v1231_v56 = vpop.f32.mrb[36].mxu0  ;;  %v1642_v41 = vld [vmem:[#allocation8 + $0xd0] sm:$0xff] }
 0x368   :  { %1564 = vst [vmem:[#allocation10 + $0x80] sm:$0xff] %v1532_v58  ;;  %v1534_v30 = vmul.f32 0.25, %v1438_v54  ;;  %v1312_v17 = vmul.f32 %v1231_v56, %v2177_v33  ;;  %v1233_v25 = vpop.f32.mrb[37].mxu0  ;;  %v1026_v33 = vadd.f32 %v2517_v50, %v609_v22  ;;  %v2520_v58 = vld [vmem:[#allocation54_spill] sm:$0xff] }
 0x369   :  { %1565 = vst [vmem:[#allocation10 + $0x88] sm:$0xff] %v1533_v13  ;;  %v1535_v0 = vmul.f32 0.25, %v1439_v15  ;;  %v1313_v18 = vmul.f32 %v1233_v25, %v2173_v37  ;;  %v1235_v23 = vpop.f32.mrb[38].mxu0  ;;  %v612_v54 = vadd.f32 %v1642_v41, %v2520_v58  ;;  %v1027_v13 = vadd.f32 %v2193_v46, %v610_v2 }
 0x36a   :  { %1566 = vst [vmem:[#allocation10 + $0x90] sm:$0xff] %v1534_v30  ;;  %v1344_v1 = vadd.f32 %v1312_v17, %v1231_v56  ;;  %v1314_v45 = vmul.f32 %v1235_v23, %v2171_v12  ;;  %v1237_v9 = vpop.f32.mrb[39].mxu0  ;;  %v2519_v12 = vld [vmem:[#allocation52_spill] sm:$0xff] }
 0x36b   :  { %1567 = vst [vmem:[#allocation10 + $0x98] sm:$0xff] %v1535_v0  ;;  %v1345_v51 = vadd.f32 %v1313_v18, %v1233_v25  ;;  %v1315_v44 = vmul.f32 %v1237_v9, %v2517_v50  ;;  %v611_v47 = vadd.f32 %v1641_v40, %v2519_v12  ;;  %v1029_v63 = vadd.f32 %v2187_v19, %v612_v54  ;;  %v1646_v50 = vld [vmem:[#allocation8 + $0xf0] sm:$0xff] }
 0x36c   :  { %v1440_v20 = vadd.f32 %v1344_v1, %v1023_v35  ;;  %v1346_v43 = vadd.f32 %v1314_v45, %v1235_v23  ;;  %v614_v1 = vadd.f32 %v1644_v38, %v2064_v48 }
 0x36d   :  { %v1441_v49 = vadd.f32 %v1345_v51, %v1024_v36  ;;  %v1347_v10 = vadd.f32 %v1315_v44, %v1237_v9  ;;  %v1028_v30 = vadd.f32 %v2189_v7, %v611_v47  ;;  %v616_v44 = vadd.f32 %v1646_v50, %v2066_v57 }
 0x36e   :  { %v1536_v53 = vmul.f32 0.25, %v1440_v20  ;;  %v1442_v4 = vadd.f32 %v1346_v43, %v1025_v5  ;;  %v1031_v20 = vadd.f32 %v2209_v61, %v614_v1 }
 0x36f   :  { %v1537_v55 = vmul.f32 0.25, %v1441_v49  ;;  %v1443_v16 = vadd.f32 %v1347_v10, %v1026_v33  ;;  %v1241_v59 = vpop.f32.mrb[40].mxu0  ;;  %v1647_v49 = vld [vmem:[#allocation8 + $0xf8] sm:$0xff]  ;;  %v2522_v33 = vld [vmem:[#allocation56_spill] sm:$0xff]  ;;  %v1033_v24 = vadd.f32 %v2203_v28, %v616_v44 }
 0x370   :  { %1568 = vst [vmem:[#allocation10 + $0xa0] sm:$0xff] %v1536_v53  ;;  %v1538_v37 = vmul.f32 0.25, %v1442_v4  ;;  %v1316_v6 = vmul.f32 %v1241_v59, %v2193_v46  ;;  %v1243_v8 = vpop.f32.mrb[41].mxu0  ;;  %v1030_v46 = vadd.f32 %v2191_v3, %v613_v11  ;;  %v617_v10 = vadd.f32 %v1647_v49, %v2522_v33 }
 0x371   :  { %1569 = vst [vmem:[#allocation10 + $0xa8] sm:$0xff] %v1537_v55  ;;  %v1539_v52 = vmul.f32 0.25, %v1443_v16  ;;  %v1317_v60 = vmul.f32 %v1243_v8, %v2189_v7  ;;  %v1245_v62 = vpop.f32.mrb[42].mxu0  ;;  %v2523_v55 = vld [vmem:[#allocation57_spill] sm:$0xff] }
 0x372   :  { %1570 = vst [vmem:[#allocation10 + $0xb0] sm:$0xff] %v1538_v37  ;;  %v1348_v15 = vadd.f32 %v1316_v6, %v1241_v59  ;;  %v1318_v56 = vmul.f32 %v1245_v62, %v2187_v19  ;;  %v1247_v39 = vpop.f32.mrb[43].mxu0  ;;  %v2521_v19 = vld [vmem:[#allocation55_spill] sm:$0xff] }
 0x373   :  { %1571 = vst [vmem:[#allocation10 + $0xb8] sm:$0xff] %v1539_v52  ;;  %v1349_v17 = vadd.f32 %v1317_v60, %v1243_v8  ;;  %v1319_v25 = vmul.f32 %v1247_v39, %v2191_v3  ;;  %v615_v22 = vadd.f32 %v1645_v32, %v2521_v19 }
 0x374   :  { %v1444_v34 = vadd.f32 %v1348_v15, %v1027_v13  ;;  %v1350_v29 = vadd.f32 %v1318_v56, %v1245_v62 }
 0x375   :  { %v1445_v0 = vadd.f32 %v1349_v17, %v1028_v30  ;;  %v1351_v18 = vadd.f32 %v1319_v25, %v1247_v39  ;;  %v1032_v53 = vadd.f32 %v2205_v14, %v615_v22 }
 0x376   :  { %v1540_v23 = vmul.f32 0.25, %v1444_v34  ;;  %v1446_v21 = vadd.f32 %v1350_v29, %v1029_v63 }
 0x377   :  { %v1541_v31 = vmul.f32 0.25, %v1445_v0  ;;  %v1447_v26 = vadd.f32 %v1351_v18, %v1030_v46  ;;  %v1251_v35 = vpop.f32.mrb[44].mxu0 }
 0x378   :  { %1572 = vst [vmem:[#allocation10 + $0xc0] sm:$0xff] %v1540_v23  ;;  %v1542_v7 = vmul.f32 0.25, %v1446_v21  ;;  %v1320_v45 = vmul.f32 %v1251_v35, %v2209_v61  ;;  %v1253_v9 = vpop.f32.mrb[45].mxu0  ;;  %v1034_v61 = vadd.f32 %v2523_v55, %v617_v10 }
 0x379   :  { %1573 = vst [vmem:[#allocation10 + $0xc8] sm:$0xff] %v1541_v31  ;;  %v1543_v36 = vmul.f32 0.25, %v1447_v26  ;;  %v1321_v3 = vmul.f32 %v1253_v9, %v2205_v14  ;;  %v1255_v51 = vpop.f32.mrb[46].mxu0 }
 0x37a   :  { %1574 = vst [vmem:[#allocation10 + $0xd0] sm:$0xff] %v1542_v7  ;;  %v1352_v48 = vadd.f32 %v1320_v45, %v1251_v35  ;;  %v1322_v5 = vmul.f32 %v1255_v51, %v2203_v28  ;;  %v1257_v43 = vpop.f32.mrb[47].mxu0 }
 0x37b   :  { %1575 = vst [vmem:[#allocation10 + $0xd8] sm:$0xff] %v1543_v36  ;;  %v1353_v4 = vadd.f32 %v1321_v3, %v1253_v9  ;;  %v1323_v16 = vmul.f32 %v1257_v43, %v2523_v55 }
 0x37c   :  { %v1448_v59 = vadd.f32 %v1352_v48, %v1031_v20  ;;  %v1354_v57 = vadd.f32 %v1322_v5, %v1255_v51 }
 0x37d   :  { %v1449_v27 = vadd.f32 %v1353_v4, %v1032_v53  ;;  %v1355_v2 = vadd.f32 %v1323_v16, %v1257_v43 }
 0x37e   :  { %v1544_v37 = vmul.f32 0.25, %v1448_v59  ;;  %v1450_v6 = vadd.f32 %v1354_v57, %v1033_v24 }
 0x37f   :  { %v1545_v8 = vmul.f32 0.25, %v1449_v27  ;;  %v1451_v40 = vadd.f32 %v1355_v2, %v1034_v61 }
 0x380   :  { %1576 = vst [vmem:[#allocation10 + $0xe0] sm:$0xff] %v1544_v37  ;;  %v1546_v12 = vmul.f32 0.25, %v1450_v6 }
 0x381   :  { %1577 = vst [vmem:[#allocation10 + $0xe8] sm:$0xff] %v1545_v8  ;;  %v1547_v14 = vmul.f32 0.25, %v1451_v40 }
 0x382   :  { %1578 = vst [vmem:[#allocation10 + $0xf0] sm:$0xff] %v1546_v12 }
 0x383   :  { %1579 = vst [vmem:[#allocation10 + $0xf8] sm:$0xff] %v1547_v14 }
 0x384   :  { %1703 = shalt.err (!%p1700_p6)
}
 0x385   :  { %s1704_s12 = scalar_lea.hbm %s2365_s2, 4096 }
 0x386   :  { %p1705_p7 = scmp.ne.s32.totalorder %s2365_s2, %s1704_s12  ;;  %p1708_p8 = scmp.lt.u32.totalorder %s1704_s12, %s2365_s2 }
 0x388   :  { %p1710_p9 = pnand %p1708_p8, %p1705_p7 }
 0x38a   :  { %1713 = shalt.err (!%p1710_p9)
}
 0x38b   :  { %1591 = dma.vmem_to_hbm [thread:$0]  %s1586_s8, 4096, %s2365_s2, [#allocation7], %s1724_s0, %s1724_s0, %s1725_s5  }
 0x38c   :  { %1718 = dma.done.wait [#allocation7], 4096  }
 0x38d   :  { %1719 = vsyncadd [#allocation7], 4294963200 }
 0x38e   :  { %1595 = vsyncpa [#allocation6], 1 }
 0x38f   :  { %1596 = vsyncpa [#allocation9], 1 }
 0x390   :  { %1597 = vsyncpa [#allocation7], 1 }

</bundles_post_ra>
